<compile_context>
chip_gen: v5e
topology: v5e:2x2
jax: 0.10.0
libtpu: 0.0.40
codegen_flags: <defaults>
</compile_context>

<pallas_src>
import jax
import jax.numpy as jnp
from jax import lax
from jax.experimental import pallas as pl
from jax.experimental.pallas import tpu as pltpu


def _nearest_upsample(t, H, W):
    """PyTorch nn.Upsample(mode='nearest') semantics: src = floor(dst * in / out)."""
    _, _, h, w = t.shape
    rows = (jnp.arange(H) * h) // H
    cols = (jnp.arange(W) * w) // W
    return t[:, :, rows][:, :, :, cols]


def _choose_hw_tile(hw, max_tile=2048):
    """Largest multiple-of-128 divisor of hw that is <= max_tile (else the full hw)."""
    if hw % 128 != 0 or hw <= max_tile:
        return hw
    cand = max_tile - (max_tile % 128)
    while cand >= 128:
        if hw % cand == 0:
            return cand
        cand -= 128
    return hw


_NT = (((1,), (1,)), ((), ()))          # contract the trailing (lane / HW) dims: A @ B^T
_HI = jax.lax.Precision.HIGHEST         # full-f32 MXU passes (keeps centers accurate)


def _ifv_kernel(kv_ref, fS_ref, fT_ref, tS_ref, tT_ref, o_ref,
                numS_ref, numT_ref, denS_ref, denT_ref, acc_ref):
    p = pl.program_id(1)                 # phase: 0 = class statistics, 1 = cosine / loss
    t = pl.program_id(2)                 # HW tile index
    n_tiles = pl.num_programs(2)

    @pl.when(jnp.logical_and(p == 0, t == 0))
    def _init():
        numS_ref[...] = jnp.zeros_like(numS_ref)
        numT_ref[...] = jnp.zeros_like(numT_ref)
        denS_ref[...] = jnp.zeros_like(denS_ref)
        denT_ref[...] = jnp.zeros_like(denT_ref)
        acc_ref[...] = jnp.zeros_like(acc_ref)

    # Hoisted per-tile values shared by both passes.
    fS = fS_ref[...].astype(jnp.float32)          # [C, T]
    fT = fT_ref[...].astype(jnp.float32)          # [C, T]
    tS = tS_ref[...]                              # [1, T] float32 label row
    tT = tT_ref[...]
    kv = kv_ref[...]                              # [K, 1] class values
    MS = (tS == kv).astype(jnp.float32)           # [K, T] one-hot class rows
    MT = (tT == kv).astype(jnp.float32)

    @pl.when(p == 0)
    def _pass1():                                  # class sums / counts on the MXU
        ones_row = jnp.ones_like(tS)               # [1, T]
        numS_ref[...] += lax.dot_general(fS, MS, _NT, precision=_HI,
                                         preferred_element_type=jnp.float32)
        numT_ref[...] += lax.dot_general(fT, MT, _NT, precision=_HI,
                                         preferred_element_type=jnp.float32)
        denS_ref[...] += lax.dot_general(ones_row, MS, _NT, precision=_HI,
                                         preferred_element_type=jnp.float32)
        denT_ref[...] += lax.dot_general(ones_row, MT, _NT, precision=_HI,
                                         preferred_element_type=jnp.float32)

    @pl.when(p == 1)
    def _pass2():                                  # centers -> cosine -> squared discrepancy
        eps_den = jnp.float32(1e-6)
        eps2 = jnp.float32(1e-8) * jnp.float32(1e-8)

        ctrS = numS_ref[...] * pl.reciprocal(denS_ref[...] + eps_den, approx=False)  # [C, K]
        ctrT = numT_ref[...] * pl.reciprocal(denT_ref[...] + eps_den, approx=False)

        cmapS = jnp.dot(ctrS, MS, precision=_HI, preferred_element_type=jnp.float32)  # [C, T]
        cmapT = jnp.dot(ctrT, MT, precision=_HI, preferred_element_type=jnp.float32)

        in_kS = jnp.sum(MS, axis=0, keepdims=True) > 0.5     # [1, T]: label in klass?
        in_kT = jnp.sum(MT, axis=0, keepdims=True) > 0.5

        cS = jnp.where(in_kS, cmapS, fS)           # single select replaces the blend chain
        cT = jnp.where(in_kT, cmapT, fT)

        w12S = jnp.sum(fS * cS, axis=0, keepdims=True)
        w1S = jnp.sum(fS * fS, axis=0, keepdims=True)
        w2S = jnp.sum(cS * cS, axis=0, keepdims=True)
        cosS = w12S * lax.rsqrt(jnp.maximum(w1S * w2S, eps2))

        w12T = jnp.sum(fT * cT, axis=0, keepdims=True)
        w1T = jnp.sum(fT * fT, axis=0, keepdims=True)
        w2T = jnp.sum(cT * cT, axis=0, keepdims=True)
        cosT = w12T * lax.rsqrt(jnp.maximum(w1T * w2T, eps2))

        d = cosS - cosT
        acc_ref[...] += d * d                      # lane-wide partial sums (no per-step XLU reduce)

    @pl.when(jnp.logical_and(p == 1, t == n_tiles - 1))
    def _finalize():                               # one cross-lane reduce per batch element
        o_ref[...] = jnp.sum(acc_ref[...], axis=-1, keepdims=True)


def criterion_ifv(preds_S, preds_T, target_S, target_T, klass, *, max_hw_tile=2048):
    """Pallas implementation of CriterionIFV.forward. preds_* are NCHW; targets are (N,1,h,w)."""
    N, C, H, W = preds_S.shape
    HW = H * W
    K = len(klass)

    # Plain-JAX glue: nearest-neighbour upsample of the label maps, flatten spatial dims.
    # TODO(synk): the nearest upsample is a host-side gather; not implemented inside the kernel.
    tS = _nearest_upsample(target_S.astype(jnp.float32), H, W).reshape(N, 1, HW)
    tT = _nearest_upsample(target_T.astype(jnp.float32), H, W).reshape(N, 1, HW)
    fS = preds_S.reshape(N, C, HW)                 # keep original dtype; cast in-kernel
    fT = preds_T.reshape(N, C, HW)
    kv = jnp.asarray([float(k) for k in klass], jnp.float32).reshape(K, 1)

    tile = _choose_hw_tile(HW, max_hw_tile)
    n_tiles = HW // tile

    # Explicit VMEM budget: 2 feature + 2 label blocks, double buffered, plus scratch.
    feat_bytes = C * tile * jnp.dtype(preds_S.dtype).itemsize
    blk_bytes = 2 * feat_bytes + 2 * tile * 4
    scratch_bytes = 2 * C * K * 4 + 2 * K * 4 + tile * 4
    vmem_limit = int(min(max(2 * blk_bytes + scratch_bytes + (4 << 20), 32 << 20), 64 << 20))

    partials = pl.pallas_call(
        _ifv_kernel,
        out_shape=jax.ShapeDtypeStruct((N, 1, 1), jnp.float32),
        grid_spec=pltpu.PrefetchScalarGridSpec(
            num_scalar_prefetch=0,
            grid=(N, 2, n_tiles),
            in_specs=[
                pl.BlockSpec((K, 1), lambda n, p, t: (0, 0)),                        # class values
                pl.BlockSpec((pl.Squeezed(), C, tile), lambda n, p, t: (n, 0, t)),   # feat_S
                pl.BlockSpec((pl.Squeezed(), C, tile), lambda n, p, t: (n, 0, t)),   # feat_T
                pl.BlockSpec((pl.Squeezed(), 1, tile), lambda n, p, t: (n, 0, t)),   # labels_S
                pl.BlockSpec((pl.Squeezed(), 1, tile), lambda n, p, t: (n, 0, t)),   # labels_T
            ],
            out_specs=pl.BlockSpec((pl.Squeezed(), 1, 1), lambda n, p, t: (n, 0, 0)),
            scratch_shapes=[
                pltpu.VMEM((C, K), jnp.float32),      # numS
                pltpu.VMEM((C, K), jnp.float32),      # numT
                pltpu.VMEM((1, K), jnp.float32),      # denS
                pltpu.VMEM((1, K), jnp.float32),      # denT
                pltpu.VMEM((1, tile), jnp.float32),   # lane-wide d^2 accumulator
            ],
        ),
        compiler_params=pltpu.CompilerParams(
            dimension_semantics=("parallel", "arbitrary", "arbitrary"),
            vmem_limit_bytes=vmem_limit,
        ),
    )(kv, fS, fT, tS, tT)
    return jnp.sum(partials) / jnp.float32(N * HW)


def criterion_ifv_ref(preds_S, preds_T, target_S, target_T, klass):
    """Pure-JAX reference mirroring the PyTorch module."""
    N, C, H, W = preds_S.shape
    tS = jnp.broadcast_to(_nearest_upsample(target_S.astype(jnp.float32), H, W),
                          preds_S.shape)
    tT = jnp.broadcast_to(_nearest_upsample(target_T.astype(jnp.float32), H, W),
                          preds_T.shape)
    cS, cT = preds_S, preds_T
    for k in klass:
        mS = (tS == k).astype(jnp.float32)
        mT = (tT == k).astype(jnp.float32)
        ctrS = (mS * preds_S).sum(-1).sum(-1) / (mS.sum(-1).sum(-1) + 1e-6)
        ctrT = (mT * preds_T).sum(-1).sum(-1) / (mT.sum(-1).sum(-1) + 1e-6)
        cS = (1 - mS) * cS + mS * ctrS[..., None, None]
        cT = (1 - mT) * cT + mT * ctrT[..., None, None]
    eps = 1e-8

    def cos(a, b):
        w12 = (a * b).sum(1)
        w1 = (a * a).sum(1)
        w2 = (b * b).sum(1)
        return w12 / jnp.sqrt(jnp.maximum(w1 * w2, eps * eps))

    pS = cos(preds_S, cS)
    pT = cos(preds_T, cT)
    return jnp.mean((pS - pT) ** 2)


if __name__ == "__main__":
    key = jax.random.PRNGKey(0)
    N, C, H, W = 2, 4, 16, 16      # feature maps (NCHW)
    h, w = 8, 8                    # label maps, nearest-upsampled to (H, W)
    n_class = 4
    klass = tuple(range(n_class))

    k1, k2, k3, k4 = jax.random.split(key, 4)
    preds_S = jax.random.normal(k1, (N, C, H, W), jnp.float32)
    preds_T = jax.random.normal(k2, (N, C, H, W), jnp.float32)
    # labels in [0, n_class] so some pixels fall outside `klass` (exercises the keep-feature path)
    target_S = jax.random.randint(k3, (N, 1, h, w), 0, n_class + 1).astype(jnp.float32)
    target_T = jax.random.randint(k4, (N, 1, h, w), 0, n_class + 1).astype(jnp.float32)

    loss = criterion_ifv(preds_S, preds_T, target_S, target_T, klass)
    loss = jax.block_until_ready(loss)

    ref = criterion_ifv_ref(preds_S, preds_T, target_S, target_T, klass)
    assert jnp.allclose(loss, ref, rtol=1e-3, atol=1e-6), (loss, ref)

    print("KERNEL_OK")
</pallas_src>

<mosaic_0001>
module attributes {stable_mosaic.version = 11 : i64} {
  func.func @_ifv_kernel(%arg0: i32, %arg1: i32, %arg2: i32, %arg3: memref<4x1xf32, #tpu.memory_space<vmem>>, %arg4: memref<1x4x256xf32, #tpu.memory_space<vmem>>, %arg5: memref<1x4x256xf32, #tpu.memory_space<vmem>>, %arg6: memref<1x1x256xf32, #tpu.memory_space<vmem>>, %arg7: memref<1x1x256xf32, #tpu.memory_space<vmem>>, %arg8: memref<1x1x1xf32, #tpu.memory_space<vmem>>, %arg9: memref<4x4xf32, #tpu.memory_space<vmem>>, %arg10: memref<4x4xf32, #tpu.memory_space<vmem>>, %arg11: memref<1x4xf32, #tpu.memory_space<vmem>>, %arg12: memref<1x4xf32, #tpu.memory_space<vmem>>, %arg13: memref<1x256xf32, #tpu.memory_space<vmem>>) attributes {dimension_semantics = [#tpu.dimension_semantics<parallel>, #tpu.dimension_semantics<arbitrary>, #tpu.dimension_semantics<arbitrary>], iteration_bounds = array<i64: 2, 2, 1>, scalar_prefetch = 0 : i64, scratch_operands = 5 : i64, tpu.core_type = #tpu.core_type<tc>, window_params = [{pipeline_mode = #tpu.pipeline_mode<synchronous>, transform_indices = @transform_0, window_bounds = array<i64: 4, 1>}, {transform_indices = @transform_1, window_bounds = array<i64: 1, 4, 256>}, {transform_indices = @transform_2, window_bounds = array<i64: 1, 4, 256>}, {transform_indices = @transform_3, window_bounds = array<i64: 1, 1, 256>}, {transform_indices = @transform_4, window_bounds = array<i64: 1, 1, 256>}, {transform_indices = @transform_5, window_bounds = array<i64: 1, 1, 1>}]} {
    %c0_i32 = arith.constant 0 : i32
    %0 = arith.cmpi eq, %arg1, %c0_i32 : i32
    %c0_i32_0 = arith.constant 0 : i32
    %1 = arith.cmpi eq, %arg2, %c0_i32_0 : i32
    %2 = arith.andi %0, %1 : i1
    %3 = arith.extui %2 : i1 to i32
    %c0_i32_1 = arith.constant 0 : i32
    %4 = arith.cmpi ne, %3, %c0_i32_1 : i32
    scf.if %4 {
      %cst = arith.constant 0.000000e+00 : f32
      %35 = vector.broadcast %cst : f32 to vector<4x4xf32>
      %c0_21 = arith.constant 0 : index
      %c0_22 = arith.constant 0 : index
      %36 = vector.load %arg9[%c0_21, %c0_22] : memref<4x4xf32, #tpu.memory_space<vmem>>, vector<4x4xf32>
      tpu.vector_store %arg9[%c0_21, %c0_22], %35 {strides = array<i32>} : memref<4x4xf32, #tpu.memory_space<vmem>>, vector<4x4xf32>,
      %cst_23 = arith.constant 0.000000e+00 : f32
      %37 = vector.broadcast %cst_23 : f32 to vector<4x4xf32>
      %c0_24 = arith.constant 0 : index
      %c0_25 = arith.constant 0 : index
      %38 = vector.load %arg10[%c0_24, %c0_25] : memref<4x4xf32, #tpu.memory_space<vmem>>, vector<4x4xf32>
      tpu.vector_store %arg10[%c0_24, %c0_25], %37 {strides = array<i32>} : memref<4x4xf32, #tpu.memory_space<vmem>>, vector<4x4xf32>,
      %cst_26 = arith.constant 0.000000e+00 : f32
      %39 = vector.broadcast %cst_26 : f32 to vector<1x4xf32>
      %c0_27 = arith.constant 0 : index
      %c0_28 = arith.constant 0 : index
      %40 = vector.load %arg11[%c0_27, %c0_28] : memref<1x4xf32, #tpu.memory_space<vmem>>, vector<1x4xf32>
      tpu.vector_store %arg11[%c0_27, %c0_28], %39 {strides = array<i32>} : memref<1x4xf32, #tpu.memory_space<vmem>>, vector<1x4xf32>,
      %cst_29 = arith.constant 0.000000e+00 : f32
      %41 = vector.broadcast %cst_29 : f32 to vector<1x4xf32>
      %c0_30 = arith.constant 0 : index
      %c0_31 = arith.constant 0 : index
      %42 = vector.load %arg12[%c0_30, %c0_31] : memref<1x4xf32, #tpu.memory_space<vmem>>, vector<1x4xf32>
      tpu.vector_store %arg12[%c0_30, %c0_31], %41 {strides = array<i32>} : memref<1x4xf32, #tpu.memory_space<vmem>>, vector<1x4xf32>,
      %cst_32 = arith.constant 0.000000e+00 : f32
      %43 = vector.broadcast %cst_32 : f32 to vector<1x256xf32>
      %c0_33 = arith.constant 0 : index
      %c0_34 = arith.constant 0 : index
      %44 = vector.load %arg13[%c0_33, %c0_34] : memref<1x256xf32, #tpu.memory_space<vmem>>, vector<1x256xf32>
      tpu.vector_store %arg13[%c0_33, %c0_34], %43 {strides = array<i32>} : memref<1x256xf32, #tpu.memory_space<vmem>>, vector<1x256xf32>,
    } else {
    }
    %c0 = arith.constant 0 : index
    %c0_2 = arith.constant 0 : index
    %c0_3 = arith.constant 0 : index
    %5 = vector.load %arg4[%c0, %c0_2, %c0_3] : memref<1x4x256xf32, #tpu.memory_space<vmem>>, vector<1x4x256xf32>
    %6 = vector.shape_cast %5 : vector<1x4x256xf32> to vector<4x256xf32>
    %c0_4 = arith.constant 0 : index
    %c0_5 = arith.constant 0 : index
    %c0_6 = arith.constant 0 : index
    %7 = vector.load %arg5[%c0_4, %c0_5, %c0_6] : memref<1x4x256xf32, #tpu.memory_space<vmem>>, vector<1x4x256xf32>
    %8 = vector.shape_cast %7 : vector<1x4x256xf32> to vector<4x256xf32>
    %c0_7 = arith.constant 0 : index
    %c0_8 = arith.constant 0 : index
    %c0_9 = arith.constant 0 : index
    %9 = vector.load %arg6[%c0_7, %c0_8, %c0_9] : memref<1x1x256xf32, #tpu.memory_space<vmem>>, vector<1x1x256xf32>
    %10 = vector.shape_cast %9 : vector<1x1x256xf32> to vector<1x256xf32>
    %c0_10 = arith.constant 0 : index
    %c0_11 = arith.constant 0 : index
    %c0_12 = arith.constant 0 : index
    %11 = vector.load %arg7[%c0_10, %c0_11, %c0_12] : memref<1x1x256xf32, #tpu.memory_space<vmem>>, vector<1x1x256xf32>
    %12 = vector.shape_cast %11 : vector<1x1x256xf32> to vector<1x256xf32>
    %c0_13 = arith.constant 0 : index
    %c0_14 = arith.constant 0 : index
    %13 = vector.load %arg3[%c0_13, %c0_14] : memref<4x1xf32, #tpu.memory_space<vmem>>, vector<4x1xf32>
    %14 = vector.broadcast %10 : vector<1x256xf32> to vector<4x256xf32>
    %15 = vector.broadcast %13 : vector<4x1xf32> to vector<4x256xf32>
    %16 = arith.cmpf oeq, %14, %15 : vector<4x256xf32>
    %17 = arith.extui %16 : vector<4x256xi1> to vector<4x256xi32>
    %18 = arith.sitofp %17 : vector<4x256xi32> to vector<4x256xf32>
    %19 = vector.broadcast %12 : vector<1x256xf32> to vector<4x256xf32>
    %20 = vector.broadcast %13 : vector<4x1xf32> to vector<4x256xf32>
    %21 = arith.cmpf oeq, %19, %20 : vector<4x256xf32>
    %22 = arith.extui %21 : vector<4x256xi1> to vector<4x256xi32>
    %23 = arith.sitofp %22 : vector<4x256xi32> to vector<4x256xf32>
    %c0_i32_15 = arith.constant 0 : i32
    %24 = arith.cmpi eq, %arg1, %c0_i32_15 : i32
    %25 = arith.extui %24 : i1 to i32
    %c0_i32_16 = arith.constant 0 : i32
    %26 = arith.cmpi ne, %25, %c0_i32_16 : i32
    scf.if %26 {
      %cst = arith.constant 1.000000e+00 : f32
      %35 = vector.broadcast %cst : f32 to vector<1x256xf32>
      %c0_21 = arith.constant 0 : index
      %c0_22 = arith.constant 0 : index
      %36 = vector.load %arg9[%c0_21, %c0_22] : memref<4x4xf32, #tpu.memory_space<vmem>>, vector<4x4xf32>
      %cst_23 = arith.constant dense<0.000000e+00> : vector<4x4xf32>
      %37 = tpu.matmul %6, %18, %cst_23 {dimension_numbers = #tpu.dot_dimension_numbers<[1], [1], [0], [0], [0, 0, 1, 0], [], []>, precision = #tpu.contract_precision<fp32>} : vector<4x256xf32>, vector<4x256xf32>, vector<4x4xf32> -> vector<4x4xf32>
      %38 = arith.addf %36, %37 : vector<4x4xf32>
      %c0_24 = arith.constant 0 : index
      %c0_25 = arith.constant 0 : index
      %39 = vector.load %arg9[%c0_24, %c0_25] : memref<4x4xf32, #tpu.memory_space<vmem>>, vector<4x4xf32>
      tpu.vector_store %arg9[%c0_24, %c0_25], %38 {strides = array<i32>} : memref<4x4xf32, #tpu.memory_space<vmem>>, vector<4x4xf32>,
      %c0_26 = arith.constant 0 : index
      %c0_27 = arith.constant 0 : index
      %40 = vector.load %arg10[%c0_26, %c0_27] : memref<4x4xf32, #tpu.memory_space<vmem>>, vector<4x4xf32>
      %cst_28 = arith.constant dense<0.000000e+00> : vector<4x4xf32>
      %41 = tpu.matmul %8, %23, %cst_28 {dimension_numbers = #tpu.dot_dimension_numbers<[1], [1], [0], [0], [0, 0, 1, 0], [], []>, precision = #tpu.contract_precision<fp32>} : vector<4x256xf32>, vector<4x256xf32>, vector<4x4xf32> -> vector<4x4xf32>
      %42 = arith.addf %40, %41 : vector<4x4xf32>
      %c0_29 = arith.constant 0 : index
      %c0_30 = arith.constant 0 : index
      %43 = vector.load %arg10[%c0_29, %c0_30] : memref<4x4xf32, #tpu.memory_space<vmem>>, vector<4x4xf32>
      tpu.vector_store %arg10[%c0_29, %c0_30], %42 {strides = array<i32>} : memref<4x4xf32, #tpu.memory_space<vmem>>, vector<4x4xf32>,
      %c0_31 = arith.constant 0 : index
      %c0_32 = arith.constant 0 : index
      %44 = vector.load %arg11[%c0_31, %c0_32] : memref<1x4xf32, #tpu.memory_space<vmem>>, vector<1x4xf32>
      %cst_33 = arith.constant dense<0.000000e+00> : vector<1x4xf32>
      %45 = tpu.matmul %35, %18, %cst_33 {dimension_numbers = #tpu.dot_dimension_numbers<[1], [1], [0], [0], [0, 0, 1, 0], [], []>, precision = #tpu.contract_precision<fp32>} : vector<1x256xf32>, vector<4x256xf32>, vector<1x4xf32> -> vector<1x4xf32>
      %46 = arith.addf %44, %45 : vector<1x4xf32>
      %c0_34 = arith.constant 0 : index
      %c0_35 = arith.constant 0 : index
      %47 = vector.load %arg11[%c0_34, %c0_35] : memref<1x4xf32, #tpu.memory_space<vmem>>, vector<1x4xf32>
      tpu.vector_store %arg11[%c0_34, %c0_35], %46 {strides = array<i32>} : memref<1x4xf32, #tpu.memory_space<vmem>>, vector<1x4xf32>,
      %c0_36 = arith.constant 0 : index
      %c0_37 = arith.constant 0 : index
      %48 = vector.load %arg12[%c0_36, %c0_37] : memref<1x4xf32, #tpu.memory_space<vmem>>, vector<1x4xf32>
      %cst_38 = arith.constant dense<0.000000e+00> : vector<1x4xf32>
      %49 = tpu.matmul %35, %23, %cst_38 {dimension_numbers = #tpu.dot_dimension_numbers<[1], [1], [0], [0], [0, 0, 1, 0], [], []>, precision = #tpu.contract_precision<fp32>} : vector<1x256xf32>, vector<4x256xf32>, vector<1x4xf32> -> vector<1x4xf32>
      %50 = arith.addf %48, %49 : vector<1x4xf32>
      %c0_39 = arith.constant 0 : index
      %c0_40 = arith.constant 0 : index
      %51 = vector.load %arg12[%c0_39, %c0_40] : memref<1x4xf32, #tpu.memory_space<vmem>>, vector<1x4xf32>
      tpu.vector_store %arg12[%c0_39, %c0_40], %50 {strides = array<i32>} : memref<1x4xf32, #tpu.memory_space<vmem>>, vector<1x4xf32>,
    } else {
    }
    %c1_i32 = arith.constant 1 : i32
    %27 = arith.cmpi eq, %arg1, %c1_i32 : i32
    %28 = arith.extui %27 : i1 to i32
    %c0_i32_17 = arith.constant 0 : i32
    %29 = arith.cmpi ne, %28, %c0_i32_17 : i32
    scf.if %29 {
      %cst = arith.constant 9.99999993E-9 : f32
      %cst_21 = arith.constant 9.99999993E-9 : f32
      %35 = arith.mulf %cst, %cst_21 : f32
      %c0_22 = arith.constant 0 : index
      %c0_23 = arith.constant 0 : index
      %36 = vector.load %arg9[%c0_22, %c0_23] : memref<4x4xf32, #tpu.memory_space<vmem>>, vector<4x4xf32>
      %c0_24 = arith.constant 0 : index
      %c0_25 = arith.constant 0 : index
      %37 = vector.load %arg11[%c0_24, %c0_25] : memref<1x4xf32, #tpu.memory_space<vmem>>, vector<1x4xf32>
      %cst_26 = arith.constant 9.99999997E-7 : f32
      %38 = vector.broadcast %cst_26 : f32 to vector<1x4xf32>
      %39 = arith.addf %37, %38 : vector<1x4xf32>
      %40 = tpu.reciprocal %39 : vector<1x4xf32> -> vector<1x4xf32>
      %41 = vector.broadcast %40 : vector<1x4xf32> to vector<4x4xf32>
      %42 = arith.mulf %36, %41 : vector<4x4xf32>
      %c0_27 = arith.constant 0 : index
      %c0_28 = arith.constant 0 : index
      %43 = vector.load %arg10[%c0_27, %c0_28] : memref<4x4xf32, #tpu.memory_space<vmem>>, vector<4x4xf32>
      %c0_29 = arith.constant 0 : index
      %c0_30 = arith.constant 0 : index
      %44 = vector.load %arg12[%c0_29, %c0_30] : memref<1x4xf32, #tpu.memory_space<vmem>>, vector<1x4xf32>
      %cst_31 = arith.constant 9.99999997E-7 : f32
      %45 = vector.broadcast %cst_31 : f32 to vector<1x4xf32>
      %46 = arith.addf %44, %45 : vector<1x4xf32>
      %47 = tpu.reciprocal %46 : vector<1x4xf32> -> vector<1x4xf32>
      %48 = vector.broadcast %47 : vector<1x4xf32> to vector<4x4xf32>
      %49 = arith.mulf %43, %48 : vector<4x4xf32>
      %cst_32 = arith.constant dense<0.000000e+00> : vector<4x256xf32>
      %50 = tpu.matmul %42, %18, %cst_32 {dimension_numbers = #tpu.dot_dimension_numbers<[1], [0], [0], [1], [0, 0, 1, 1], [], []>, precision = #tpu.contract_precision<fp32>} : vector<4x4xf32>, vector<4x256xf32>, vector<4x256xf32> -> vector<4x256xf32>
      %cst_33 = arith.constant dense<0.000000e+00> : vector<4x256xf32>
      %51 = tpu.matmul %49, %23, %cst_33 {dimension_numbers = #tpu.dot_dimension_numbers<[1], [0], [0], [1], [0, 0, 1, 1], [], []>, precision = #tpu.contract_precision<fp32>} : vector<4x4xf32>, vector<4x256xf32>, vector<4x256xf32> -> vector<4x256xf32>
      %cst_34 = arith.constant dense<0.000000e+00> : vector<256xf32>
      %52 = vector.multi_reduction <add>, %18, %cst_34 [0] : vector<4x256xf32> to vector<256xf32>
      %53 = vector.shape_cast %52 : vector<256xf32> to vector<1x256xf32>
      %cst_35 = arith.constant 5.000000e-01 : f32
      %54 = vector.broadcast %cst_35 : f32 to vector<1x256xf32>
      %55 = arith.cmpf ogt, %53, %54 : vector<1x256xf32>
      %cst_36 = arith.constant dense<0.000000e+00> : vector<256xf32>
      %56 = vector.multi_reduction <add>, %23, %cst_36 [0] : vector<4x256xf32> to vector<256xf32>
      %57 = vector.shape_cast %56 : vector<256xf32> to vector<1x256xf32>
      %cst_37 = arith.constant 5.000000e-01 : f32
      %58 = vector.broadcast %cst_37 : f32 to vector<1x256xf32>
      %59 = arith.cmpf ogt, %57, %58 : vector<1x256xf32>
      %60 = vector.shape_cast %55 : vector<1x256xi1> to vector<1x256xi1>
      %61 = vector.broadcast %60 : vector<1x256xi1> to vector<4x256xi1>
      %62 = arith.select %61, %50, %6 : vector<4x256xi1>, vector<4x256xf32>
      %63 = vector.shape_cast %59 : vector<1x256xi1> to vector<1x256xi1>
      %64 = vector.broadcast %63 : vector<1x256xi1> to vector<4x256xi1>
      %65 = arith.select %64, %51, %8 : vector<4x256xi1>, vector<4x256xf32>
      %66 = arith.mulf %6, %62 : vector<4x256xf32>
      %cst_38 = arith.constant dense<0.000000e+00> : vector<256xf32>
      %67 = vector.multi_reduction <add>, %66, %cst_38 [0] : vector<4x256xf32> to vector<256xf32>
      %68 = vector.shape_cast %67 : vector<256xf32> to vector<1x256xf32>
      %69 = arith.mulf %6, %6 : vector<4x256xf32>
      %cst_39 = arith.constant dense<0.000000e+00> : vector<256xf32>
      %70 = vector.multi_reduction <add>, %69, %cst_39 [0] : vector<4x256xf32> to vector<256xf32>
      %71 = vector.shape_cast %70 : vector<256xf32> to vector<1x256xf32>
      %72 = arith.mulf %62, %62 : vector<4x256xf32>
      %cst_40 = arith.constant dense<0.000000e+00> : vector<256xf32>
      %73 = vector.multi_reduction <add>, %72, %cst_40 [0] : vector<4x256xf32> to vector<256xf32>
      %74 = vector.shape_cast %73 : vector<256xf32> to vector<1x256xf32>
      %75 = arith.mulf %71, %74 : vector<1x256xf32>
      %76 = vector.broadcast %35 : f32 to vector<1x256xf32>
      %77 = arith.maximumf %75, %76 : vector<1x256xf32>
      %78 = math.rsqrt %77 : vector<1x256xf32>
      %79 = arith.mulf %68, %78 : vector<1x256xf32>
      %80 = arith.mulf %8, %65 : vector<4x256xf32>
      %cst_41 = arith.constant dense<0.000000e+00> : vector<256xf32>
      %81 = vector.multi_reduction <add>, %80, %cst_41 [0] : vector<4x256xf32> to vector<256xf32>
      %82 = vector.shape_cast %81 : vector<256xf32> to vector<1x256xf32>
      %83 = arith.mulf %8, %8 : vector<4x256xf32>
      %cst_42 = arith.constant dense<0.000000e+00> : vector<256xf32>
      %84 = vector.multi_reduction <add>, %83, %cst_42 [0] : vector<4x256xf32> to vector<256xf32>
      %85 = vector.shape_cast %84 : vector<256xf32> to vector<1x256xf32>
      %86 = arith.mulf %65, %65 : vector<4x256xf32>
      %cst_43 = arith.constant dense<0.000000e+00> : vector<256xf32>
      %87 = vector.multi_reduction <add>, %86, %cst_43 [0] : vector<4x256xf32> to vector<256xf32>
      %88 = vector.shape_cast %87 : vector<256xf32> to vector<1x256xf32>
      %89 = arith.mulf %85, %88 : vector<1x256xf32>
      %90 = vector.broadcast %35 : f32 to vector<1x256xf32>
      %91 = arith.maximumf %89, %90 : vector<1x256xf32>
      %92 = math.rsqrt %91 : vector<1x256xf32>
      %93 = arith.mulf %82, %92 : vector<1x256xf32>
      %94 = arith.subf %79, %93 : vector<1x256xf32>
      %c0_44 = arith.constant 0 : index
      %c0_45 = arith.constant 0 : index
      %95 = vector.load %arg13[%c0_44, %c0_45] : memref<1x256xf32, #tpu.memory_space<vmem>>, vector<1x256xf32>
      %96 = arith.mulf %94, %94 : vector<1x256xf32>
      %97 = arith.addf %95, %96 : vector<1x256xf32>
      %c0_46 = arith.constant 0 : index
      %c0_47 = arith.constant 0 : index
      %98 = vector.load %arg13[%c0_46, %c0_47] : memref<1x256xf32, #tpu.memory_space<vmem>>, vector<1x256xf32>
      tpu.vector_store %arg13[%c0_46, %c0_47], %97 {strides = array<i32>} : memref<1x256xf32, #tpu.memory_space<vmem>>, vector<1x256xf32>,
    } else {
    }
    %c1_i32_18 = arith.constant 1 : i32
    %30 = arith.cmpi eq, %arg1, %c1_i32_18 : i32
    %c0_i32_19 = arith.constant 0 : i32
    %31 = arith.cmpi eq, %arg2, %c0_i32_19 : i32
    %32 = arith.andi %30, %31 : i1
    %33 = arith.extui %32 : i1 to i32
    %c0_i32_20 = arith.constant 0 : i32
    %34 = arith.cmpi ne, %33, %c0_i32_20 : i32
    scf.if %34 {
      %c0_21 = arith.constant 0 : index
      %c0_22 = arith.constant 0 : index
      %35 = vector.load %arg13[%c0_21, %c0_22] : memref<1x256xf32, #tpu.memory_space<vmem>>, vector<1x256xf32>
      %cst = arith.constant dense<0.000000e+00> : vector<1xf32>
      %36 = vector.multi_reduction <add>, %35, %cst [1] : vector<1x256xf32> to vector<1xf32>
      %37 = vector.shape_cast %36 : vector<1xf32> to vector<1x1xf32>
      %c0_23 = arith.constant 0 : index
      %c0_24 = arith.constant 0 : index
      %c0_25 = arith.constant 0 : index
      %38 = vector.load %arg8[%c0_23, %c0_24, %c0_25] : memref<1x1x1xf32, #tpu.memory_space<vmem>>, vector<1x1x1xf32>
      %39 = vector.shape_cast %38 : vector<1x1x1xf32> to vector<1x1xf32>
      %40 = vector.shape_cast %37 : vector<1x1xf32> to vector<1x1x1xf32>
      tpu.vector_store %arg8[%c0_23, %c0_24, %c0_25], %40 {strides = array<i32>} : memref<1x1x1xf32, #tpu.memory_space<vmem>>, vector<1x1x1xf32>,
    } else {
    }
    return
  }
  func.func @transform_0(%arg0: i32, %arg1: i32, %arg2: i32) -> (i32, i32) {
    %c0_i32 = arith.constant 0 : i32
    %c0_i32_0 = arith.constant 0 : i32
    %c0_i32_1 = arith.constant 0 : i32
    return %c0_i32, %c0_i32_0 : i32, i32
  }
  func.func @transform_1(%arg0: i32, %arg1: i32, %arg2: i32) -> (i32, i32, i32) {
    %c0_i32 = arith.constant 0 : i32
    %c0_i32_0 = arith.constant 0 : i32
    return %arg0, %c0_i32, %arg2 : i32, i32, i32
  }
  func.func @transform_2(%arg0: i32, %arg1: i32, %arg2: i32) -> (i32, i32, i32) {
    %c0_i32 = arith.constant 0 : i32
    %c0_i32_0 = arith.constant 0 : i32
    return %arg0, %c0_i32, %arg2 : i32, i32, i32
  }
  func.func @transform_3(%arg0: i32, %arg1: i32, %arg2: i32) -> (i32, i32, i32) {
    %c0_i32 = arith.constant 0 : i32
    %c0_i32_0 = arith.constant 0 : i32
    return %arg0, %c0_i32, %arg2 : i32, i32, i32
  }
  func.func @transform_4(%arg0: i32, %arg1: i32, %arg2: i32) -> (i32, i32, i32) {
    %c0_i32 = arith.constant 0 : i32
    %c0_i32_0 = arith.constant 0 : i32
    return %arg0, %c0_i32, %arg2 : i32, i32, i32
  }
  func.func @transform_5(%arg0: i32, %arg1: i32, %arg2: i32) -> (i32, i32, i32) {
    %c0_i32 = arith.constant 0 : i32
    %c0_i32_0 = arith.constant 0 : i32
    %c0_i32_1 = arith.constant 0 : i32
    return %arg0, %c0_i32, %c0_i32_0 : i32, i32, i32
  }
}

</mosaic_0001>

<bundles_post_ra>
// kernel: tpu_custom_call.1
= control target key start
LH: loop header
LB: loop body
LE: loop exit
PB: predicated region body
PF: predicated region fallthrough
CT: control target
= control target key end

     0   :  { %s3389_s0 = inlined_call_operand.vmem [shape: f32[4,1], index: 0, kind: input, shape index: {}]   ;;  %s3390_s1 = inlined_call_operand.hbm [shape: f32[2,4,256], index: 1, kind: input, shape index: {}]   ;;  %s3391_s2 = inlined_call_operand.hbm [shape: f32[2,4,256], index: 2, kind: input, shape index: {}]   ;;  %s3392_s3 = inlined_call_operand.vmem [shape: f32[2,1,256], index: 3, kind: input, shape index: {}]   ;;  %s3393_s4 = inlined_call_operand.vmem [shape: f32[2,1,256], index: 4, kind: input, shape index: {}]   ;;  %s3394_s5 = inlined_call_operand.vmem [shape: f32[2,1,1], index: 5, kind: output, shape index: {}]  }
   0x1   :  { %3396 = sst [smem:[#allocation15_spill]] %s3390_s1 }
   0x2   :  { %10 = vsyncpa [#allocation8], 0 }
   0x3   :  { %12 = vsyncpa [#allocation8 + $0x1], 0 }
   0x4   :  { %13 = vsyncpa [#allocation10], 0 }
   0x5   :  { %15 = vsyncpa [#allocation10 + $0x1], 0  ;;  %s2947_s18 = smov 0   ;;  %s2949_s19 = smov 0  }
   0x6   :  { %s2951_s20 = smov 0   ;;  %s2953_s21 = smov 0  }
   0x7   :  { %s2955_s22 = smov 0   ;;  %s2957_s23 = smov 0  }
   0x8   :  { %s2959_s24 = smov 0   ;;  %s2961_s25 = smov 0  }
   0x9 LB: > { %s2621_s26 = sadd.s32 4294967295, %s2910_s25   ;;  %s36_s27 = sadd.s32 1, %s2902_s23  ;;  %s2910_s25 = sphi %s2961_s25, %s21_s25   ;;  %s2906_s24 = sphi %s2959_s24, %s3422_s24   ;;  %s2902_s23 = sphi %s2957_s23, %s3421_s23   ;;  %s2898_s22 = sphi %s2955_s22, %s3420_s22   ;;  %s2894_s21 = sphi %s2953_s21, %s3419_s21   ;;  %s2890_s20 = sphi %s2951_s20, %s3418_s20   ;;  %s2886_s19 = sphi %s2949_s19, %s3417_s19   ;;  %s2882_s18 = sphi %s2947_s18, %s3416_s18  }
   0xa   : > { %p38_p0 = scmp.ge.s32.totalorder %s36_s27, 2  ;;  %s40_s28 = sadd.s32 1, %s2906_s24 }
   0xb   : > { %s70_s29 = sadd.s32 1, %s2890_s20  ;;  %p77_p1 = scmp.ne.s32.totalorder %s2890_s20, %s2886_s19 }
   0xc   : > { %s3424_s27 = smov (%p38_p0, %s36_s27), 0  ;;  %s3426_s28 = smov (!%p38_p0, %s40_s28), %s2906_s24 }
   0xd   : > { %3397 = sst [smem:[#allocation13_spill]] %s3424_s27  ;;  %p78_p2 = scmp.eq.s32.totalorder %s2910_s25, 0 }
   0xe   : > { %p83_p3 = scmp.ne.s32.totalorder %s2886_s19, %s2882_s18  ;;  %p42_p4 = scmp.ge.s32.totalorder %s3426_s28, 2 }
   0xf   : > { %p84_p5 = scmp.eq.s32.totalorder %s2621_s26, 0  ;;  %p2996_p6 = por %p78_p2, %p77_p1 }
  0x10   : > { %s3428_s28 = smov (%p42_p4, %s3426_s28), 0  ;;  %p2697_p8 = scmp.lt.s32.totalorder %s2910_s25, 4 }
  0x11   : > { %3399 = sst [smem:[#allocation14_spill]] %s3428_s28  ;;  %p3002_p7 = por %p84_p5, %p83_p3 }
  0x12   : > { %s65_s7 = ssub.s32 %s2906_s24, %s3428_s28  ;;  %s220_s8 = sand.u32 1, %s2890_s20  }
  0x13   : > { %p68_p9 = scmp.eq.s32.totalorder %s65_s7, 0  ;;  %s2625_s9 = sshll.u32 %s220_s8, 3 }
  0x14   : > { %s2682_s10 = sshll.u32 %s2906_s24, 3  ;;  %s3401_s1 = sld [smem:[#allocation15_spill]] }
  0x15   : > { %s3012_s11 = scalar_select %p68_p9, %s2890_s20, %s70_s29  }
  0x16   : > { %s224_s16 = scalar_lea.vmem [#allocation7], %s2625_s9  ;;  %p2691_p10 = pnand %p2697_p8, %p2996_p6 }
  0x17   : > { %s235_s17 = sshll.u32 %s224_s16, 4  ;;  %p2631_p11 = scmp.ge.s32.totalorder %s2910_s25, 1  ;;  %s236_s17 = int_to_ptr.vmem [resolvable:$true] %s235_s17 }
  0x18   : > { %p286_p12 = scmp.lt.s32.totalorder %s2910_s25, 5  ;;  %s221_s18 = scalar_lea.sflag [#allocation8], %s220_s8 }
  0x19   : > { %s253_s7 = scalar_lea.hbm %s3391_s2, %s2682_s10  ;;  %s246_s12 = scalar_lea.vmem [#allocation9], %s2625_s9 }
  0x1a   : > { %s231_s14 = scalar_lea.hbm %s3401_s1, %s2682_s10  ;;  %p287_p13 = pnand %p2631_p11, %p286_p12 }
  0x1b   : > { %s233_s15 = sshll.u32 %s231_s14, 4  ;;  %s255_s28 = sshll.u32 %s253_s7, 4  ;;  %s234_s15 = int_to_ptr.hbm [resolvable:$true] %s233_s15  ;;  %s256_s28 = int_to_ptr.hbm [resolvable:$true] %s255_s28 }
  0x1c   : > { %2693 = dma.hbm_to_vmem [thread:$0]  (!%p2691_p10), %s234_s15, 128, %s236_s17, %s221_s18  }
  0x1d   : > { %s257_s13 = sshll.u32 %s246_s12, 4  ;;  %s243_s14 = scalar_lea.sflag [#allocation10], %s220_s8  ;;  %s258_s13 = int_to_ptr.vmem [resolvable:$true] %s257_s13 }
  0x1e   : > { %2696 = dma.hbm_to_vmem [thread:$0]  (!%p2691_p10), %s256_s28, 128, %s258_s13, %s243_s14  }
  0x1f   : > { %290 = sbr.rel (%p287_p13) target bundleno = 823 (0x337), region = 40  ;;  %s292_s30 = sand.u32 (!%p287_p13), 1, %s2886_s19  }
  0x20   : > { %s2632_s16 = sshll.u32 (!%p287_p13), %s292_s30, 3  ;;  %s293_s1 = scalar_lea.sflag (!%p287_p13), [#allocation8], %s292_s30 }
  0x21   : > { %s296_s27 = scalar_lea.vmem (!%p287_p13), [#allocation7], %s2632_s16 }
  0x24   : > { %2873 = dma.done.wait (%p3002_p7), %s293_s1, 128  }
  0x25   : > { %2875 = vsyncadd (%p3002_p7), %s293_s1, 4294967168  ;;  %s303_s10 = scalar_lea.sflag [#allocation10], %s292_s30  ;;  %s306_s9 = scalar_lea.vmem [#allocation9], %s2632_s16 }
  0x26   : > { %2877 = dma.done.wait (%p3002_p7), %s303_s10, 128  }
  0x27   : > { %2879 = vsyncadd (%p3002_p7), %s303_s10, 4294967168  ;;  %p356_p0 = scmp.lt.s32.totalorder %s2898_s22, 1  ;;  %p376_p1 = scmp.eq.s32.totalorder %s2894_s21, 0 }
  0x28   : > { %vm382_vm0 = vcmask (%p376_p1), 27648   ;;  %vm385_vm1 = vcmask (%p376_p1), 24576   ;;  %v388_v0 = vlaneseq (%p376_p1)  ;;  %v2912_v1 = vmov (%p376_p1), 0.0  }
  0x29   : > { %s3430_s22 = smov (!%p356_p0, %s2898_s22), 1  ;;  %381 = sbr.rel (!%p376_p1) target bundleno = 46 (0x2e), region = 52  ;;  %383 = vst.msk [vmem:[#allocation2] sm:$0xf] (%p376_p1), %vm382_vm0, %v2912_v1 }
  0x2a   : > { %s2634_s28 = sshll.u32 %s3430_s22, 1  ;;  %s375_s15 = scalar_lea.vmem %s3394_s5, %s3430_s22  ;;  %384 = vst.msk [vmem:[#allocation3] sm:$0xf] (%p376_p1), %vm382_vm0, %v2912_v1  ;;  %vm390_vm2 = vcmp.lt.s32.totalorder (%p376_p1), %v388_v0, 256 }
  0x2b   : > { %s362_s26 = scalar_lea.vmem %s3392_s3, %s2634_s28  ;;  %s371_s7 = scalar_lea.vmem %s3393_s4, %s2634_s28  ;;  %386 = vst.msk [vmem:[#allocation4] sm:$0x1] (%p376_p1), %vm385_vm1, %v2912_v1 }
  0x2c   : > { %387 = vst.msk [vmem:[#allocation5] sm:$0x1] (%p376_p1), %vm385_vm1, %v2912_v1 }
  0x2d   : > { %392 = vst.msk [vmem:[#allocation6] sm:$0x3] (%p376_p1), %vm390_vm2, %v2912_v1 }
  0x2e PF: > { %v397_v2 = vld [vmem:[%s3389_s0] sm:$0xf]  ;;  %v2913_v3 = vmov 0   ;;  %v3056_v5 = vld [vmem:[%s306_s9] sm:$0xff]  ;;  %v2914_v17 = vmov 0.0   ;;  %p2641_p2 = scmp.ne.s32.totalorder %s2894_s21, 0 }
  0x2f   : > { %2767 = vset.pattern.permute.xlu0 %v2913_v3  ;;  %v3054_v4 = vld [vmem:[%s296_s27] sm:$0xff] }
  0x30   : > { %405 = vperm.xlu0 %2767, %v397_v2   ;;  %v395_v6 = vld [vmem:[%s362_s26] sm:$0x3] }
  0x31   : > { %v396_v7 = vld [vmem:[%s371_s7] sm:$0x3]  ;;  %v399_v8 = vperm.slane %v395_v6, 0  ;;  %v400_v9 = vperm.slane %v395_v6, 1 }
  0x32   : > { %v415_v10 = vperm.slane %v396_v7, 0  ;;  %v416_v11 = vperm.slane %v396_v7, 1 }
  0xa0   : > { %427 = sbr.rel (%p2641_p2) target bundleno = 408 (0x198), region = 56 }
  0xa2   : > { %v406_v12 = vpop.permute.xlu0 %405 }
  0xa3   : > { %vm3058_vm3 = vcmp.eq.f32.partialorder %v399_v8, %v406_v12  ;;  %vm3062_vm4 = vcmp.eq.f32.partialorder %v400_v9, %v406_v12  ;;  %vm3066_vm5 = vcmp.eq.f32.partialorder %v415_v10, %v406_v12  ;;  %vm3070_vm6 = vcmp.eq.f32.partialorder %v416_v11, %v406_v12 }
  0xa4   : > { %v3076_v18 = vsel %vm3058_vm3, 1.0, %v2914_v17  ;;  %v3080_v19 = vsel %vm3062_vm4, 1.0, %v2914_v17  ;;  %v3084_v20 = vsel %vm3066_vm5, 1.0, %v2914_v17  ;;  %v3088_v21 = vsel %vm3070_vm6, 1.0, %v2914_v17 }
  0xa5   : > { %v3093_v22 = vsub.f32 %v3076_v18, %v3076_v18  ;;  %430 = vst [vmem:[#allocation1] ss:$2 sm:$0xff] %v3054_v4  ;;  %v3098_v23 = vsub.f32 %v3080_v19, %v3080_v19  ;;  %v2915_v24 = vmov 1.0   ;;  %v3123_v29 = vsub.f32 %v3084_v20, %v3084_v20 }
  0xa6   : > { %2643 = vmatpush.xpose.msk.msra.mxu3 %vm3058_vm3, %v2915_v24  ;;  %2642 = vmatpush.xpose.msk.msra.mxu0 %vm3058_vm3, %v2915_v24  ;;  %v3149_v44 = vsub.f32 %v3088_v21, %v3088_v21  ;;  %v2916_v63 = vmov 0.0   ;;  %vm728_vm7 = vcmask 27648   ;;  %vm1299_vm8 = vcmask 24576  }
  0xa7   : > { %504 = vmatpush.xpose.msra.mxu2 %v3093_v22  ;;  %v3108_v25 = vand.u32 4294901760, %v3093_v22  ;;  %v3111_v26 = vand.u32 4294901760, %v3098_v23  ;;  %v3133_v36 = vand.u32 4294901760, %v3123_v29 }
  0xa8   : > { %v3155_v49 = vand.u32 4294901760, %v3149_v44 }
  0xa9   : > { %v479_v27 = vsub.f32 %v3093_v22, %v3108_v25  ;;  %v625_v28 = vsub.f32 %v3098_v23, %v3111_v26  ;;  %v781_v41 = vsub.f32 %v3123_v29, %v3133_v36 }
  0xaa   : > { %553 = vmatpush.xpose.msrb.mxu0 %v3108_v25  ;;  %v927_v52 = vsub.f32 %v3149_v44, %v3155_v49 }
  0xab   : > { %2645 = vmatpush.xpose.msk.msrb.mxu2 %vm3062_vm4, %v2915_v24  ;;  %v3125_v30 = vand.u32 4294901760, %v479_v27  ;;  %v3127_v31 = vand.u32 4294901760, %v625_v28  ;;  %v3151_v47 = vand.u32 4294901760, %v781_v41 }
  0xac   : > { %v431_v32 = vld.sshfl [vmem:[#allocation1] sm:$0xff pattern:$0x75316420]  ;;  %v432_v33 = vld.sshfl [vmem:[#allocation1 + $0x8] sm:$0xff pattern:$0x75316420] }
  0xad   : > { %v452_v34 = vand.u32 4294901760, %v431_v32  ;;  %v598_v35 = vand.u32 4294901760, %v432_v33  ;;  %732 = vst [vmem:[#allocation1] ss:$2 sm:$0xff] %v3056_v5  ;;  %481 = vmatpush.xpose.msra.mxu1 %v3125_v30  ;;  %627 = vmatpush.xpose.msrb.mxu3 %v3127_v31  ;;  %v928_v55 = vand.u32 4294901760, %v927_v52 }
  0xaf   : > { %v453_v37 = vsub.f32 %v431_v32, %v452_v34  ;;  %v599_v38 = vsub.f32 %v432_v33, %v598_v35 }
  0xb0   : > { %483 = vmatmul.f32.vlgmr.msra.gmra.mxu1 %v452_v34 }
  0xb1   : > { %2644 = vmatpush.xpose.msk.msrb.mxu1 %vm3058_vm3, %v2915_v24  ;;  %507 = vmatmul.f32.vlgmr.msra.gmra.mxu2 %v453_v37  ;;  %v454_v39 = vand.u32 4294901760, %v453_v37  ;;  %v600_v40 = vand.u32 4294901760, %v599_v38 }
  0xb2   : > { %699 = vmatpush.xpose.msra.mxu2 %v3111_v26 }
  0xb3   : > { %531 = vmatmul.f32.vlgmr.msra.gmra.mxu3 %v454_v39  ;;  %v455_v42 = vsub.f32 %v453_v37, %v454_v39  ;;  %v601_v43 = vsub.f32 %v599_v38, %v600_v40 }
  0xb4   : > { %2647 = vmatpush.xpose.msk.msra.mxu3 %vm3062_vm4, %v2915_v24  ;;  %v733_v48 = vld.sshfl [vmem:[#allocation1] sm:$0xff pattern:$0x75316420]  ;;  %v734_v50 = vld.sshfl [vmem:[#allocation1 + $0x8] sm:$0xff pattern:$0x75316420] }
  0xb5   : > { %2646 = vmatpush.xpose.msk.msra.mxu1 %vm3062_vm4, %v2915_v24  ;;  %v456_v45 = vand.u32 4294901760, %v455_v42  ;;  %v602_v46 = vand.u32 4294901760, %v601_v43  ;;  %v754_v51 = vand.u32 4294901760, %v733_v48  ;;  %v900_v53 = vand.u32 4294901760, %v734_v50 }
  0xb7   : > { %457 = vmatmul.f32.vlgmr.msra.gmra.mxu0 %v456_v45  ;;  %v755_v54 = vsub.f32 %v733_v48, %v754_v51  ;;  %v901_v56 = vsub.f32 %v734_v50, %v900_v53 }
  0xb8   : > { %577 = vmatmul.f32.vlgmr.msrb.gmra.mxu1 %v452_v34  ;;  %650 = vmatpush.xpose.msra.mxu0 %v3098_v23 }
  0xb9   : > { %603 = vmatmul.f32.vlgmr.msrb.gmra.mxu2 %v602_v46  ;;  %783 = vmatpush.xpose.msrb.mxu1 %v3151_v47  ;;  %v756_v57 = vand.u32 4294901760, %v755_v54  ;;  %v902_v58 = vand.u32 4294901760, %v901_v56 }
  0xba   : > { %806 = vmatpush.xpose.msrb.mxu2 %v3123_v29 }
  0xbb   : > { %629 = vmatmul.f32.vlgmr.msrb.gmra.mxu3 %v598_v35  ;;  %v757_v59 = vsub.f32 %v755_v54, %v756_v57  ;;  %v903_v60 = vsub.f32 %v901_v56, %v902_v58 }
  0xbc   : > { %2649 = vmatpush.xpose.msk.msrb.mxu3 %vm3066_vm5, %v2915_v24 }
  0xbd   : > { %v758_v61 = vand.u32 4294901760, %v757_v59  ;;  %v904_v62 = vand.u32 4294901760, %v903_v60 }
  0xbf   : > { %555 = vmatmul.f32.vlgmr.msrb.gmra.mxu0 %v452_v34 }
  0xc0   : > { %677 = vmatmul.f32.vlgmr.msra.gmra.mxu1 %v600_v40  ;;  %2648 = vmatpush.xpose.msk.msrb.mxu0 %vm3066_vm5, %v2915_v24 }
  0xc1   : > { %701 = vmatmul.f32.vlgmr.msra.gmra.mxu2 %v598_v35  ;;  %2650 = vmatpush.xpose.msk.msra.mxu1 %vm3066_vm5, %v2915_v24 }
  0xc2   : > { %2651 = vmatpush.xpose.msk.msra.mxu2 %vm3070_vm6, %v2915_v24 }
  0xc3   : > { %723 = vmatmul.f32.vlgmr.msra.gmra.mxu3 %v598_v35 }
  0xc4   : > { %929 = vmatpush.xpose.msra.mxu3 %v928_v55 }
  0xc7   : > { %653 = vmatmul.f32.vlgmr.msra.gmra.mxu0 %v599_v38 }
  0xc8   : > { %785 = vmatmul.f32.vlgmr.msrb.gmra.mxu1 %v754_v51  ;;  %855 = vmatpush.xpose.msra.mxu0 %v3133_v36 }
  0xc9   : > { %809 = vmatmul.f32.vlgmr.msrb.gmra.mxu2 %v755_v54  ;;  %2652 = vmatpush.xpose.msk.msrb.mxu1 %vm3070_vm6, %v2915_v24  ;;  %v730_v54 = vld [vmem:[#allocation3] sm:$0xf] }
  0xca   : > { %1001 = vmatpush.xpose.msrb.mxu2 %v3155_v49 }
  0xcb   : > { %833 = vmatmul.f32.vlgmr.msrb.gmra.mxu3 %v756_v57 }
  0xcc   : > { %2653 = vmatpush.xpose.msk.msrb.mxu3 %vm3070_vm6, %v2915_v24 }
  0xcf   : > { %759 = vmatmul.f32.vlgmr.msrb.gmra.mxu0 %v758_v61 }
  0xd0   : > { %879 = vmatmul.f32.vlgmr.msra.gmra.mxu1 %v754_v51  ;;  %952 = vmatpush.xpose.msrb.mxu0 %v3149_v44 }
  0xd1   : > { %905 = vmatmul.f32.vlgmr.msra.gmra.mxu2 %v904_v62  ;;  %1073 = vmatpush.xpose.msra.mxu1 %v3125_v30 }
  0xd2   : > { %1095 = vmatpush.xpose.msra.mxu2 %v3093_v22 }
  0xd3   : > { %931 = vmatmul.f32.vlgmr.msra.gmra.mxu3 %v900_v53 }
  0xd4   : > { %2655 = vmatpush.xpose.msk.msra.mxu3 %vm3058_vm3, %v2915_v24 }
  0xd7   : > { %857 = vmatmul.f32.vlgmr.msra.gmra.mxu0 %v754_v51 }
  0xd8   : > { %979 = vmatmul.f32.vlgmr.msrb.gmra.mxu1 %v902_v58  ;;  %2654 = vmatpush.xpose.msk.msra.mxu0 %vm3058_vm3, %v2915_v24 }
  0xd9   : > { %1003 = vmatmul.f32.vlgmr.msrb.gmra.mxu2 %v900_v53  ;;  %2656 = vmatpush.xpose.msk.msrb.mxu1 %vm3058_vm3, %v2915_v24 }
  0xda   : > { %2657 = vmatpush.xpose.msk.msrb.mxu2 %vm3062_vm4, %v2915_v24 }
  0xdb   : > { %1025 = vmatmul.f32.vlgmr.msrb.gmra.mxu3 %v900_v53 }
  0xdc   : > { %1206 = vmatpush.xpose.msrb.mxu3 %v3127_v31 }
  0xdf   : > { %955 = vmatmul.f32.vlgmr.msrb.gmra.mxu0 %v901_v56 }
  0xe0   : > { %1074 = vmatmul.f32.vlgmr.msra.gmra.mxu1 %v2915_v24  ;;  %1139 = vmatpush.xpose.msrb.mxu0 %v3108_v25 }
  0xe1   : > { %1096 = vmatmul.f32.vlgmr.msra.gmra.mxu2 %v2916_v63  ;;  %2658 = vmatpush.xpose.msk.msra.mxu1 %vm3062_vm4, %v2915_v24 }
  0xe2   : > { %1272 = vmatpush.xpose.msra.mxu2 %v3111_v26 }
  0xe3   : > { %1117 = vmatmul.f32.vlgmr.msra.gmra.mxu3 %v2916_v63 }
  0xe4   : > { %2659 = vmatpush.xpose.msk.msra.mxu3 %vm3062_vm4, %v2915_v24 }
  0xe7   : > { %1049 = vmatmul.f32.vlgmr.msra.gmra.mxu0 %v2916_v63 }
  0xe8   : > { %1161 = vmatmul.f32.vlgmr.msrb.gmra.mxu1 %v2915_v24  ;;  %1228 = vmatpush.xpose.msra.mxu0 %v3098_v23 }
  0xe9   : > { %1182 = vmatmul.f32.vlgmr.msrb.gmra.mxu2 %v2916_v63  ;;  %1343 = vmatpush.xpose.msrb.mxu1 %v3151_v47 }
  0xea   : > { %1365 = vmatpush.xpose.msrb.mxu2 %v3123_v29  ;;  %v428_v29 = vld [vmem:[#allocation2] sm:$0xf] }
  0xeb   : > { %1207 = vmatmul.f32.vlgmr.msrb.gmra.mxu3 %v2915_v24 }
  0xec   : > { %2661 = vmatpush.xpose.msk.msrb.mxu3 %vm3066_vm5, %v2915_v24 }
  0xef   : > { %1140 = vmatmul.f32.vlgmr.msrb.gmra.mxu0 %v2915_v24 }
  0xf0   : > { %1250 = vmatmul.f32.vlgmr.msra.gmra.mxu1 %v2916_v63  ;;  %2660 = vmatpush.xpose.msk.msrb.mxu0 %vm3066_vm5, %v2915_v24 }
  0xf1   : > { %1273 = vmatmul.f32.vlgmr.msra.gmra.mxu2 %v2915_v24  ;;  %2662 = vmatpush.xpose.msk.msra.mxu1 %vm3066_vm5, %v2915_v24 }
  0xf2   : > { %2663 = vmatpush.xpose.msk.msra.mxu2 %vm3070_vm6, %v2915_v24 }
  0xf3   : > { %1294 = vmatmul.f32.vlgmr.msra.gmra.mxu3 %v2915_v24 }
  0xf4   : > { %1476 = vmatpush.xpose.msra.mxu3 %v928_v55 }
  0xf7   : > { %1229 = vmatmul.f32.vlgmr.msra.gmra.mxu0 %v2916_v63 }
  0xf8   : > { %1344 = vmatmul.f32.vlgmr.msrb.gmra.mxu1 %v2915_v24  ;;  %1409 = vmatpush.xpose.msra.mxu0 %v3133_v36 }
  0xf9   : > { %1366 = vmatmul.f32.vlgmr.msrb.gmra.mxu2 %v2916_v63  ;;  %2664 = vmatpush.xpose.msk.msrb.mxu1 %vm3070_vm6, %v2915_v24 }
  0xfa   : > { %1542 = vmatpush.xpose.msrb.mxu2 %v3155_v49 }
  0xfb   : > { %1387 = vmatmul.f32.vlgmr.msrb.gmra.mxu3 %v2916_v63 }
  0xfc   : > { %2665 = vmatpush.xpose.msk.msrb.mxu3 %vm3070_vm6, %v2915_v24 }
  0xff   : > { %1319 = vmatmul.f32.vlgmr.msrb.gmra.mxu0 %v2916_v63 }
 0x100   : > { %1498 = vmatpush.xpose.msrb.mxu0 %v3149_v44  ;;  %1431 = vmatmul.f32.vlgmr.msra.gmra.mxu1 %v2915_v24 }
 0x101   : > { %1452 = vmatmul.f32.vlgmr.msra.gmra.mxu2 %v2916_v63 }
 0x103   : > { %1477 = vmatmul.f32.vlgmr.msra.gmra.mxu3 %v2915_v24 }
 0x107   : > { %1410 = vmatmul.f32.vlgmr.msra.gmra.mxu0 %v2915_v24 }
 0x108   : > { %1520 = vmatmul.f32.vlgmr.msrb.gmra.mxu1 %v2916_v63 }
 0x109   : > { %1543 = vmatmul.f32.vlgmr.msrb.gmra.mxu2 %v2915_v24 }
 0x10b   : > { %1564 = vmatmul.f32.vlgmr.msrb.gmra.mxu3 %v2915_v24 }
 0x10f   : > { %1499 = vmatmul.f32.vlgmr.msrb.gmra.mxu0 %v2916_v63 }
 0x12d   : > { %v484_v0 = vpop.f32.mrf.mxu1 }
 0x134   : > { %v458_v1 = vpop.f32.mrf.mxu0  ;;  %v508_v2 = vpop.f32.mrf.mxu2 }
 0x135   : > { %v485_v3 = vadd.f32 %v484_v0, %v458_v1  ;;  %v578_v6 = vpop.f32.mrf.mxu1 }
 0x136   : > { %v532_v7 = vpop.f32.mrf.mxu3 }
 0x137   : > { %v509_v8 = vadd.f32 %v508_v2, %v485_v3 }
 0x139   : > { %v533_v9 = vadd.f32 %v532_v7, %v509_v8 }
 0x13c   : > { %v556_v10 = vpop.f32.mrf.mxu0  ;;  %v604_v11 = vpop.f32.mrf.mxu2 }
 0x13d   : > { %v557_v12 = vadd.f32 %v556_v10, %v533_v9  ;;  %v678_v13 = vpop.f32.mrf.mxu1 }
 0x13e   : > { %v630_v14 = vpop.f32.mrf.mxu3 }
 0x13f   : > { %v579_v15 = vadd.f32 %v578_v6, %v557_v12 }
 0x141   : > { %v605_v16 = vadd.f32 %v604_v11, %v579_v15 }
 0x143   : > { %v631_v17 = vadd.f32 %v630_v14, %v605_v16  ;;  %v1031_v16 = vld [vmem:[#allocation4] sm:$0x1] }
 0x144   : > { %v654_v22 = vpop.f32.mrf.mxu0  ;;  %v702_v23 = vpop.f32.mrf.mxu2 }
 0x145   : > { %v655_v24 = vadd.f32 %v654_v22, %v631_v17  ;;  %v786_v25 = vpop.f32.mrf.mxu1 }
 0x146   : > { %v724_v26 = vpop.f32.mrf.mxu3 }
 0x147   : > { %v679_v27 = vadd.f32 %v678_v13, %v655_v24 }
 0x149   : > { %v703_v28 = vadd.f32 %v702_v23, %v679_v27 }
 0x14b   : > { %v725_v30 = vadd.f32 %v724_v26, %v703_v28 }
 0x14c   : > { %v760_v31 = vpop.f32.mrf.mxu0  ;;  %v810_v32 = vpop.f32.mrf.mxu2 }
 0x14d   : > { %v727_v33 = vadd.f32 %v725_v30, %v428_v29  ;;  %v787_v34 = vadd.f32 %v786_v25, %v760_v31  ;;  %v880_v35 = vpop.f32.mrf.mxu1 }
 0x14e   : > { %v834_v36 = vpop.f32.mrf.mxu3 }
 0x14f   : > { %729 = vst.msk [vmem:[#allocation2] sm:$0xf] %vm728_vm7, %v727_v33  ;;  %v811_v37 = vadd.f32 %v810_v32, %v787_v34 }
 0x151   : > { %v835_v38 = vadd.f32 %v834_v36, %v811_v37 }
 0x154   : > { %v858_v39 = vpop.f32.mrf.mxu0  ;;  %v906_v40 = vpop.f32.mrf.mxu2 }
 0x155   : > { %v859_v41 = vadd.f32 %v858_v39, %v835_v38  ;;  %v980_v42 = vpop.f32.mrf.mxu1 }
 0x156   : > { %v932_v43 = vpop.f32.mrf.mxu3 }
 0x157   : > { %v881_v44 = vadd.f32 %v880_v35, %v859_v41 }
 0x159   : > { %v907_v45 = vadd.f32 %v906_v40, %v881_v44 }
 0x15b   : > { %v933_v46 = vadd.f32 %v932_v43, %v907_v45  ;;  %v1301_v45 = vld [vmem:[#allocation5] sm:$0x1] }
 0x15c   : > { %v956_v47 = vpop.f32.mrf.mxu0  ;;  %v1004_v48 = vpop.f32.mrf.mxu2 }
 0x15d   : > { %v957_v49 = vadd.f32 %v956_v47, %v933_v46  ;;  %v1075_v50 = vpop.f32.mrf.mxu1 }
 0x15e   : > { %v1026_v51 = vpop.f32.mrf.mxu3 }
 0x15f   : > { %v981_v52 = vadd.f32 %v980_v42, %v957_v49 }
 0x161   : > { %v1005_v53 = vadd.f32 %v1004_v48, %v981_v52 }
 0x163   : > { %v1027_v55 = vadd.f32 %v1026_v51, %v1005_v53 }
 0x164   : > { %v1050_v56 = vpop.f32.mrf.mxu0  ;;  %v1097_v57 = vpop.f32.mrf.mxu2 }
 0x165   : > { %v1029_v58 = vadd.f32 %v1027_v55, %v730_v54  ;;  %v1076_v59 = vadd.f32 %v1075_v50, %v1050_v56  ;;  %v1162_v61 = vpop.f32.mrf.mxu1 }
 0x166   : > { %v1118_v60 = vpop.f32.mrf.mxu3 }
 0x167   : > { %1030 = vst.msk [vmem:[#allocation3] sm:$0xf] %vm728_vm7, %v1029_v58  ;;  %v1098_v62 = vadd.f32 %v1097_v57, %v1076_v59 }
 0x169   : > { %v1119_v63 = vadd.f32 %v1118_v60, %v1098_v62 }
 0x16c   : > { %v1141_v0 = vpop.f32.mrf.mxu0  ;;  %v1183_v1 = vpop.f32.mrf.mxu2 }
 0x16d   : > { %v1142_v2 = vadd.f32 %v1141_v0, %v1119_v63  ;;  %v1251_v7 = vpop.f32.mrf.mxu1 }
 0x16e   : > { %v1208_v3 = vpop.f32.mrf.mxu3 }
 0x16f   : > { %v1163_v6 = vadd.f32 %v1162_v61, %v1142_v2 }
 0x171   : > { %v1184_v8 = vadd.f32 %v1183_v1, %v1163_v6 }
 0x173   : > { %v1209_v9 = vadd.f32 %v1208_v3, %v1184_v8 }
 0x174   : > { %v1230_v10 = vpop.f32.mrf.mxu0  ;;  %v1274_v11 = vpop.f32.mrf.mxu2 }
 0x175   : > { %v1231_v12 = vadd.f32 %v1230_v10, %v1209_v9  ;;  %v1345_v17 = vpop.f32.mrf.mxu1 }
 0x176   : > { %v1295_v13 = vpop.f32.mrf.mxu3 }
 0x177   : > { %v1252_v14 = vadd.f32 %v1251_v7, %v1231_v12 }
 0x179   : > { %v1275_v15 = vadd.f32 %v1274_v11, %v1252_v14 }
 0x17b   : > { %v1296_v22 = vadd.f32 %v1295_v13, %v1275_v15 }
 0x17c   : > { %v1320_v23 = vpop.f32.mrf.mxu0  ;;  %v1367_v24 = vpop.f32.mrf.mxu2 }
 0x17d   : > { %v1298_v25 = vadd.f32 %v1296_v22, %v1031_v16  ;;  %v1346_v26 = vadd.f32 %v1345_v17, %v1320_v23  ;;  %v1432_v29 = vpop.f32.mrf.mxu1 }
 0x17e   : > { %v1388_v27 = vpop.f32.mrf.mxu3 }
 0x17f   : > { %1300 = vst.msk [vmem:[#allocation4] sm:$0x1] %vm1299_vm8, %v1298_v25  ;;  %v1368_v28 = vadd.f32 %v1367_v24, %v1346_v26 }
 0x181   : > { %v1389_v30 = vadd.f32 %v1388_v27, %v1368_v28 }
 0x184   : > { %v1411_v31 = vpop.f32.mrf.mxu0  ;;  %v1453_v32 = vpop.f32.mrf.mxu2 }
 0x185   : > { %v1412_v33 = vadd.f32 %v1411_v31, %v1389_v30  ;;  %v1521_v39 = vpop.f32.mrf.mxu1 }
 0x186   : > { %v1478_v34 = vpop.f32.mrf.mxu3 }
 0x187   : > { %v1433_v35 = vadd.f32 %v1432_v29, %v1412_v33 }
 0x189   : > { %v1454_v36 = vadd.f32 %v1453_v32, %v1433_v35 }
 0x18b   : > { %v1479_v37 = vadd.f32 %v1478_v34, %v1454_v36 }
 0x18c   : > { %v1500_v38 = vpop.f32.mrf.mxu0  ;;  %v1544_v41 = vpop.f32.mrf.mxu2 }
 0x18d   : > { %v1501_v40 = vadd.f32 %v1500_v38, %v1479_v37 }
 0x18e   : > { %v1565_v43 = vpop.f32.mrf.mxu3 }
 0x18f   : > { %v1522_v42 = vadd.f32 %v1521_v39, %v1501_v40 }
 0x191   : > { %v1545_v44 = vadd.f32 %v1544_v41, %v1522_v42 }
 0x193   : > { %v1566_v46 = vadd.f32 %v1565_v43, %v1545_v44 }
 0x195   : > { %v1568_v47 = vadd.f32 %v1566_v46, %v1301_v45 }
 0x197   : > { %1569 = vst.msk [vmem:[#allocation5] sm:$0x1] %vm1299_vm8, %v1568_v47 }
 0x198 PF: > { %p1570_p3 = scmp.eq.s32.totalorder %s2894_s21, 1  ;;  %p2666_p4 = scmp.ne.s32.totalorder %s2894_s21, 1 }
 0x19a   : > { %1573 = sbr.rel (%p2666_p4) target bundleno = 694 (0x2b6), region = 60 }
 0x19f   : > { %vm1620_vm9 = vcmask 1043456   ;;  %v1575_v48 = vld [vmem:[#allocation4] sm:$0x1]  ;;  %v1596_v52 = vld [vmem:[#allocation5] sm:$0x1]  ;;  %vm1616_vm1 = vcmask 31744  }
 0x1a0   : > { %v1622_v49 = vsel %vm1620_vm9, %v3076_v18, 0  ;;  %v1576_v50 = vadd.f32 1e-06, %v1575_v48  ;;  %2668 = vmatpush.msk.msra.mxu3 %vm1620_vm9, %v3076_v18  ;;  %2667 = vmatpush.msk.msra.mxu0 %vm1620_vm9, %v3076_v18  ;;  %v1625_v51 = vsel %vm1620_vm9, %v3080_v19, 0  ;;  %v1597_v55 = vadd.f32 1e-06, %v1596_v52 }
 0x1a1   : > { %v1669_v53 = vsub.f32 %v1622_v49, %v1622_v49  ;;  %v3255_v54 = vsub.f32 %v1625_v51, %v1625_v51  ;;  %2257 = vst [vmem:[#allocation1] ss:$2 sm:$0xff] %v3054_v4  ;;  %v1923_v12 = vsel %vm1620_vm9, %v3084_v20, 0  ;;  %v1574_v17 = vld [vmem:[#allocation2] sm:$0xf]  ;;  %v1926_v37 = vsel %vm1620_vm9, %v3088_v21, 0 }
 0x1a2   : > { %2768 = vrcp.f32 %v1576_v50  ;;  %v1588_v1 = vand.u32 2147483648, %v1576_v50  ;;  %vm1582_vm10 = vweird.f32 %v1576_v50  ;;  %v1586_v6 = vand.u32 2147483647, %v1576_v50  ;;  %v1595_v36 = vld [vmem:[#allocation3] sm:$0xf] }
 0x1a3   : > { %1696 = vmatpush.msra.mxu2 %v1669_v53  ;;  %v1670_v56 = vand.u32 4294901760, %v1669_v53  ;;  %v1816_v57 = vand.u32 4294901760, %v3255_v54  ;;  %2770 = vrcp.f32 %v1597_v55  ;;  %vm1603_vm14 = vweird.f32 %v1597_v55 }
 0x1a4   : > { %v1589_v9 = vor.u32 1.1754944e-38, %v1588_v1  ;;  %vm1587_vm13 = vcmp.eq.f32.partialorder %v1586_v6, 8.507059e+37  ;;  %v1609_v13 = vand.u32 2147483648, %v1597_v55  ;;  %v1607_v16 = vand.u32 2147483647, %v1597_v55 }
 0x1a5   : > { %2670 = vmatpush.msk.msrb.mxu2 %vm1620_vm9, %v3080_v19  ;;  %v1671_v58 = vsub.f32 %v1669_v53, %v1670_v56  ;;  %1745 = vmatpush.msrb.mxu0 %v1670_v56  ;;  %v1817_v59 = vsub.f32 %v3255_v54, %v1816_v57  ;;  %v1970_v24 = vsub.f32 %v1923_v12, %v1923_v12  ;;  %v2220_v56 = vsel %vm1620_vm9, %v3076_v18, 0.0 }
 0x1a6   : > { %v1610_v25 = vor.u32 1.1754944e-38, %v1609_v13  ;;  %vm1608_vm2 = vcmp.eq.f32.partialorder %v1607_v16, 8.507059e+37  ;;  %v2116_v41 = vsub.f32 %v1926_v37, %v1926_v37 }
 0x1a7   : > { %v1672_v60 = vand.u32 4294901760, %v1671_v58  ;;  %v1818_v61 = vand.u32 4294901760, %v1817_v59  ;;  %v1971_v29 = vand.u32 4294901760, %v1970_v24 }
 0x1a8   : > { %v2769_v62 = vpop.eup %2768  ;;  %v2117_v44 = vand.u32 4294901760, %v2116_v41  ;;  %v2258_v52 = vld.sshfl [vmem:[#allocation1] sm:$0xff pattern:$0x75316420] }
 0x1a9   : > { %v2771_v63 = vpop.eup %2770  ;;  %v1578_v0 = vmul.f32 %v2769_v62, %v1576_v50  ;;  %1673 = vmatpush.msra.mxu1 %v1672_v60  ;;  %1819 = vmatpush.msrb.mxu3 %v1818_v61  ;;  %vm1583_vm11 = vweird.f32 %v2769_v62  ;;  %v1972_v33 = vsub.f32 %v1970_v24, %v1971_v29  ;;  %v2259_v53 = vld.sshfl [vmem:[#allocation1 + $0x8] sm:$0xff pattern:$0x75316420]  ;;  %v2221_v60 = vrot.slane %v2220_v56, 4 }
 0x1aa   : > { %v1599_v2 = vmul.f32 %v2771_v63, %v1597_v55  ;;  %vm1584_vm12 = vmor %vm1582_vm10, %vm1583_vm11  ;;  %vm1604_vm15 = vweird.f32 %v2771_v63  ;;  %v2118_v46 = vsub.f32 %v2116_v41, %v2117_v44  ;;  %2269 = vst [vmem:[#allocation1] ss:$2 sm:$0xff] %v3056_v5  ;;  %v2227_v55 = vsel %vm1620_vm9, %v3080_v19, 0.0 }
 0x1ab   : > { %2669 = vmatpush.msk.msrb.mxu1 %vm1620_vm9, %v3076_v18  ;;  %v1579_v3 = vsub.f32 1.0, %v1578_v0  ;;  %vm1605_vm0 = vmor %vm1603_vm14, %vm1604_vm15  ;;  %v1973_v39 = vand.u32 4294901760, %v1972_v33  ;;  %v2222_v0 = vadd.f32 %v2221_v60, %v2220_v56 }
 0x1ac   : > { %v1600_v7 = vsub.f32 1.0, %v1599_v2  ;;  %v2119_v48 = vand.u32 4294901760, %v2118_v46 }
 0x1ad   : > { %v1580_v8 = vmul.f32 %v2769_v62, %v1579_v3  ;;  %v2223_v3 = vrot.slane %v2222_v0, 2 }
 0x1ae   : > { %v1601_v10 = vmul.f32 %v2771_v63, %v1600_v7 }
 0x1af   : > { %v1581_v11 = vadd.f32 %v2769_v62, %v1580_v8 }
 0x1b0   : > { %v1602_v15 = vadd.f32 %v2771_v63, %v1601_v10  ;;  %v2224_v10 = vadd.f32 %v2223_v3, %v2222_v0 }
 0x1b1   : > { %v1585_v14 = vsel %vm1584_vm12, %v2769_v62, %v1581_v11 }
 0x1b2   : > { %v1590_v22 = vsel %vm1587_vm13, %v1589_v9, %v1585_v14  ;;  %v1606_v27 = vsel %vm1605_vm0, %v2771_v63, %v1602_v15  ;;  %v2225_v13 = vrot.slane %v2224_v10, 1 }
 0x1b3   : > { %v1592_v23 = vperm.slane %v1590_v22, 0  ;;  %v1611_v31 = vsel %vm1608_vm2, %v1610_v25, %v1606_v27 }
 0x1b4   : > { %v1613_v34 = vperm.slane %v1611_v31, 0  ;;  %v2226_v27 = vadd.f32 %v2225_v13, %v2224_v10  ;;  %v2236_v31 = vsel %vm1620_vm9, %v3084_v20, 0.0 }
 0x1b5   : > { %v1594_v26 = vmul.f32 %v1592_v23, %v1574_v17  ;;  %v2237_v37 = vrot.slane %v2236_v31, 4 }
 0x1b6   : > { %v1615_v40 = vmul.f32 %v1613_v34, %v1595_v36  ;;  %vm2234_vm4 = vcmp.gt.f32.partialorder %v2226_v27, 0.5 }
 0x1b7   : > { %v1618_v28 = vsel %vm1616_vm1, %v1594_v26, 0 }
 0x1b8   : > { %v1644_v30 = vand.u32 4294901760, %v1618_v28  ;;  %v1920_v43 = vsel %vm1616_vm1, %v1615_v40, 0 }
 0x1b9   : > { %v1945_v45 = vand.u32 4294901760, %v1920_v43 }
 0x1ba   : > { %v1645_v32 = vsub.f32 %v1618_v28, %v1644_v30  ;;  %1675 = vmatmul.f32.vlgmr.msra.gmra.mxu1 %v1644_v30 }
 0x1bb   : > { %2671 = vmatpush.msk.msra.mxu1 %vm1620_vm9, %v3080_v19  ;;  %v1946_v47 = vsub.f32 %v1920_v43, %v1945_v45  ;;  %v2271_v43 = vld.sshfl [vmem:[#allocation1 + $0x8] sm:$0xff pattern:$0x75316420] }
 0x1bc   : > { %1699 = vmatmul.f32.vlgmr.msra.gmra.mxu2 %v1645_v32  ;;  %v1646_v35 = vand.u32 4294901760, %v1645_v32 }
 0x1bd   : > { %1891 = vmatpush.msra.mxu2 %v1816_v57  ;;  %v1947_v49 = vand.u32 4294901760, %v1946_v47  ;;  %v2228_v57 = vrot.slane %v2227_v55, 4 }
 0x1be   : > { %1723 = vmatmul.f32.vlgmr.msra.gmra.mxu3 %v1646_v35  ;;  %v1647_v38 = vsub.f32 %v1645_v32, %v1646_v35 }
 0x1bf   : > { %2672 = vmatpush.msk.msra.mxu3 %vm1620_vm9, %v3080_v19  ;;  %v1948_v50 = vsub.f32 %v1946_v47, %v1947_v49  ;;  %v2229_v63 = vadd.f32 %v2228_v57, %v2227_v55 }
 0x1c0   : > { %v1648_v42 = vand.u32 4294901760, %v1647_v38 }
 0x1c1   : > { %v1949_v51 = vand.u32 4294901760, %v1948_v50  ;;  %v2230_v1 = vrot.slane %v2229_v63, 2 }
 0x1c2   : > { %1649 = vmatmul.f32.vlgmr.msra.gmra.mxu0 %v1648_v42  ;;  %1769 = vmatmul.f32.vlgmr.msrb.gmra.mxu1 %v1644_v30 }
 0x1c3   : > { %1842 = vmatpush.msra.mxu0 %v3255_v54  ;;  %1974 = vmatpush.msrb.mxu1 %v1973_v39  ;;  %v2231_v9 = vadd.f32 %v2230_v1, %v2229_v63 }
 0x1c4   : > { %1795 = vmatmul.f32.vlgmr.msrb.gmra.mxu2 %v1648_v42  ;;  %v2270_v42 = vld.sshfl [vmem:[#allocation1] sm:$0xff pattern:$0x75316420] }
 0x1c5   : > { %1997 = vmatpush.msrb.mxu2 %v1970_v24  ;;  %v2232_v12 = vrot.slane %v2231_v9, 1  ;;  %v2243_v24 = vsel %vm1620_vm9, %v3088_v21, 0.0 }
 0x1c6   : > { %1821 = vmatmul.f32.vlgmr.msrb.gmra.mxu3 %v1644_v30 }
 0x1c7   : > { %2674 = vmatpush.msk.msrb.mxu3 %vm1620_vm9, %v3084_v20  ;;  %v2233_v23 = vadd.f32 %v2232_v12, %v2231_v9 }
 0x1c9   : > { %vm2235_vm3 = vcmp.gt.f32.partialorder %v2233_v23, 0.5 }
 0x1ca   : > { %1747 = vmatmul.f32.vlgmr.msrb.gmra.mxu0 %v1644_v30  ;;  %1869 = vmatmul.f32.vlgmr.msra.gmra.mxu1 %v1646_v35 }
 0x1cb   : > { %2673 = vmatpush.msk.msrb.mxu0 %vm1620_vm9, %v3084_v20  ;;  %2675 = vmatpush.msk.msra.mxu1 %vm1620_vm9, %v3084_v20 }
 0x1cc   : > { %1893 = vmatmul.f32.vlgmr.msra.gmra.mxu2 %v1644_v30 }
 0x1cd   : > { %2676 = vmatpush.msk.msra.mxu2 %vm1620_vm9, %v3088_v21 }
 0x1ce   : > { %1915 = vmatmul.f32.vlgmr.msra.gmra.mxu3 %v1644_v30 }
 0x1cf   : > { %2120 = vmatpush.msra.mxu3 %v2119_v48 }
 0x1d2   : > { %1845 = vmatmul.f32.vlgmr.msra.gmra.mxu0 %v1645_v32  ;;  %1976 = vmatmul.f32.vlgmr.msrb.gmra.mxu1 %v1945_v45 }
 0x1d3   : > { %2046 = vmatpush.msra.mxu0 %v1971_v29  ;;  %2677 = vmatpush.msk.msrb.mxu1 %vm1620_vm9, %v3088_v21  ;;  %v2244_v29 = vrot.slane %v2243_v24, 4 }
 0x1d4   : > { %2000 = vmatmul.f32.vlgmr.msrb.gmra.mxu2 %v1946_v47 }
 0x1d5   : > { %2192 = vmatpush.msrb.mxu2 %v2117_v44  ;;  %v2245_v38 = vadd.f32 %v2244_v29, %v2243_v24 }
 0x1d6   : > { %2024 = vmatmul.f32.vlgmr.msrb.gmra.mxu3 %v1947_v49 }
 0x1d7   : > { %2678 = vmatpush.msk.msrb.mxu3 %vm1620_vm9, %v3088_v21  ;;  %v2246_v46 = vrot.slane %v2245_v38, 2 }
 0x1d9   : > { %v2247_v50 = vadd.f32 %v2246_v46, %v2245_v38 }
 0x1da   : > { %1950 = vmatmul.f32.vlgmr.msrb.gmra.mxu0 %v1949_v51  ;;  %2070 = vmatmul.f32.vlgmr.msra.gmra.mxu1 %v1945_v45 }
 0x1db   : > { %2143 = vmatpush.msrb.mxu0 %v2116_v41  ;;  %v2248_v56 = vrot.slane %v2247_v50, 1 }
 0x1dc   : > { %2096 = vmatmul.f32.vlgmr.msra.gmra.mxu2 %v1949_v51 }
 0x1dd   : > { %v2249_v3 = vadd.f32 %v2248_v56, %v2247_v50 }
 0x1de   : > { %2122 = vmatmul.f32.vlgmr.msra.gmra.mxu3 %v1945_v45 }
 0x1df   : > { %vm2251_vm5 = vcmp.gt.f32.partialorder %v2249_v3, 0.5 }
 0x1e2   : > { %2048 = vmatmul.f32.vlgmr.msra.gmra.mxu0 %v1945_v45  ;;  %2170 = vmatmul.f32.vlgmr.msrb.gmra.mxu1 %v1947_v49 }
 0x1e4   : > { %2194 = vmatmul.f32.vlgmr.msrb.gmra.mxu2 %v1945_v45 }
 0x1e6   : > { %2216 = vmatmul.f32.vlgmr.msrb.gmra.mxu3 %v1945_v45  ;;  %v2238_v45 = vadd.f32 %v2237_v37, %v2236_v31 }
 0x1e8   : > { %v2239_v49 = vrot.slane %v2238_v45, 2 }
 0x1ea   : > { %2146 = vmatmul.f32.vlgmr.msrb.gmra.mxu0 %v1946_v47  ;;  %v2240_v55 = vadd.f32 %v2239_v49, %v2238_v45 }
 0x1ec   : > { %v2241_v1 = vrot.slane %v2240_v55, 1 }
 0x1ee   : > { %v2242_v12 = vadd.f32 %v2241_v1, %v2240_v55 }
 0x1f0   : > { %vm2250_vm6 = vcmp.gt.f32.partialorder %v2242_v12, 0.5 }
 0x237   : > { %v1676_v54 = vpop.f32.mrf.mxu1 }
 0x23f   : > { %v1650_v58 = vpop.f32.mrf.mxu0  ;;  %v1700_v59 = vpop.f32.mrf.mxu2 }
 0x240   : > { %v1770_v62 = vpop.f32.mrf.mxu1  ;;  %v1677_v7 = vadd.f32 %v1676_v54, %v1650_v58 }
 0x241   : > { %v1724_v61 = vpop.f32.mrf.mxu3 }
 0x242   : > { %v1701_v11 = vadd.f32 %v1700_v59, %v1677_v7 }
 0x244   : > { %v1725_v16 = vadd.f32 %v1724_v61, %v1701_v11 }
 0x247   : > { %v1748_v2 = vpop.f32.mrf.mxu0  ;;  %v1796_v6 = vpop.f32.mrf.mxu2 }
 0x248   : > { %v1870_v19 = vpop.f32.mrf.mxu1  ;;  %v1749_v25 = vadd.f32 %v1748_v2, %v1725_v16 }
 0x249   : > { %v1822_v8 = vpop.f32.mrf.mxu3 }
 0x24a   : > { %v1823_v18 = vadd.f32 %v1822_v8, %v1796_v6  ;;  %v1771_v32 = vadd.f32 %v1770_v62, %v1749_v25 }
 0x24c   : > { %v2262_v40 = vsel %vm2234_vm4, %v1771_v32, %v2258_v52 }
 0x24d   : > { %v2323_v52 = vmul.f32 %v2262_v40, %v2262_v40 }
 0x24f   : > { %v1846_v14 = vpop.f32.mrf.mxu0  ;;  %v1894_v15 = vpop.f32.mrf.mxu2  ;;  %v2325_v0 = vsel %vm1620_vm9, %v2323_v52, 0.0 }
 0x250   : > { %v1847_v17 = vadd.f32 %v1846_v14, %v1823_v18  ;;  %v1977_v30 = vpop.f32.mrf.mxu1  ;;  %v2326_v9 = vrot.slane %v2325_v0, 4 }
 0x251   : > { %v1916_v22 = vpop.f32.mrf.mxu3 }
 0x252   : > { %v1871_v26 = vadd.f32 %v1870_v19, %v1847_v17 }
 0x254   : > { %v1895_v28 = vadd.f32 %v1894_v15, %v1871_v26 }
 0x256   : > { %v1917_v33 = vadd.f32 %v1916_v22, %v1895_v28  ;;  %v2327_v22 = vadd.f32 %v2326_v9, %v2325_v0 }
 0x257   : > { %v1951_v34 = vpop.f32.mrf.mxu0  ;;  %v2001_v35 = vpop.f32.mrf.mxu2 }
 0x258   : > { %v2263_v36 = vsel %vm2235_vm3, %v1917_v33, %v2259_v53  ;;  %v2071_v20 = vpop.f32.mrf.mxu1  ;;  %v1978_v51 = vadd.f32 %v1977_v30, %v1951_v34  ;;  %v2302_v53 = vmul.f32 %v3054_v4, %v3054_v4  ;;  %v2328_v31 = vrot.slane %v2327_v22, 2 }
 0x259   : > { %v2278_v39 = vrot.slane %v2263_v36, 4  ;;  %v2025_v21 = vpop.f32.mrf.mxu3  ;;  %v2324_v57 = vmul.f32 %v2263_v36, %v2263_v36  ;;  %vm2462_vm3 = vcmask 1040384  }
 0x25a   : > { %v2002_v58 = vadd.f32 %v2001_v35, %v1978_v51 }
 0x25b   : > { %v2279_v41 = vsel %vm1620_vm9, %v2262_v40, %v2278_v39 }
 0x25c   : > { %v2281_v44 = vmul.f32 %v2279_v41, %v3054_v4  ;;  %v2332_v4 = vsel %vm1620_vm9, %v2324_v57, 0.0  ;;  %v2026_v6 = vadd.f32 %v2025_v21, %v2002_v58  ;;  %v2329_v21 = vadd.f32 %v2328_v31, %v2327_v22 }
 0x25d   : > { %v2333_v11 = vrot.slane %v2332_v4, 4 }
 0x25e   : > { %2283 = vst [vmem:[#allocation1] ss:$2 sm:$0xff] %v2281_v44  ;;  %v2330_v46 = vrot.slane %v2329_v21, 1 }
 0x25f   : > { %v2049_v47 = vpop.f32.mrf.mxu0  ;;  %v2097_v48 = vpop.f32.mrf.mxu2  ;;  %v2334_v27 = vadd.f32 %v2333_v11, %v2332_v4 }
 0x260   : > { %v2171_v63 = vpop.f32.mrf.mxu1  ;;  %v2050_v10 = vadd.f32 %v2049_v47, %v2026_v6 }
 0x261   : > { %v2123_v54 = vpop.f32.mrf.mxu3  ;;  %v2335_v36 = vrot.slane %v2334_v27, 2 }
 0x262   : > { %v2124_v61 = vadd.f32 %v2123_v54, %v2097_v48  ;;  %v2072_v23 = vadd.f32 %v2071_v20, %v2050_v10  ;;  %v2331_v54 = vadd.f32 %v2330_v46, %v2329_v21 }
 0x264   : > { %v2274_v32 = vsel %vm2250_vm6, %v2072_v23, %v2270_v42  ;;  %v2391_v42 = vmul.f32 %v3056_v5, %v3056_v5 }
 0x265   : > { %v3300_v59 = vld.sshfl [vmem:[#allocation1] sm:$0xff pattern:$0x75316420]  ;;  %v3302_v60 = vld.sshfl [vmem:[#allocation1 + $0x8] sm:$0xff pattern:$0x75316420]  ;;  %v2412_v39 = vmul.f32 %v2274_v32, %v2274_v32 }
 0x266   : > { %2304 = vst [vmem:[#allocation1] ss:$2 sm:$0xff] %v2302_v53  ;;  %v2295_v23 = vsel %vm1620_vm9, %v3302_v60, 0.0 }
 0x267   : > { %v2147_v62 = vpop.f32.mrf.mxu0  ;;  %v2195_v7 = vpop.f32.mrf.mxu2  ;;  %v2414_v45 = vsel %vm1620_vm9, %v2412_v39, 0.0 }
 0x268   : > { %v2148_v2 = vadd.f32 %v2147_v62, %v2124_v61  ;;  %v2415_v49 = vrot.slane %v2414_v45, 4 }
 0x269   : > { %v2217_v19 = vpop.f32.mrf.mxu3 }
 0x26a   : > { %v2172_v8 = vadd.f32 %v2171_v63, %v2148_v2  ;;  %v2416_v57 = vadd.f32 %v2415_v49, %v2414_v45 }
 0x26c   : > { %v2196_v18 = vadd.f32 %v2195_v7, %v2172_v8  ;;  %v2417_v63 = vrot.slane %v2416_v57, 2 }
 0x26d   : > { %v2305_v13 = vld.sshfl [vmem:[#allocation1] sm:$0xff pattern:$0x75316420]  ;;  %v2306_v14 = vld.sshfl [vmem:[#allocation1 + $0x8] sm:$0xff pattern:$0x75316420] }
 0x26e   : > { %v2218_v15 = vadd.f32 %v2217_v19, %v2196_v18  ;;  %v2309_v16 = vsel %vm1620_vm9, %v2305_v13, 0.0  ;;  %v2316_v17 = vsel %vm1620_vm9, %v2306_v14, 0.0  ;;  %v2418_v9 = vadd.f32 %v2417_v63, %v2416_v57 }
 0x26f   : > { %v2310_v24 = vrot.slane %v2309_v16, 4  ;;  %v2317_v25 = vrot.slane %v2316_v17, 4 }
 0x270   : > { %v2275_v26 = vsel %vm2251_vm5, %v2218_v15, %v2271_v43  ;;  %v2336_v43 = vadd.f32 %v2335_v36, %v2334_v27  ;;  %v2419_v13 = vrot.slane %v2418_v9, 1  ;;  %v2288_v15 = vsel %vm1620_vm9, %v3300_v59, 0.0 }
 0x271   : > { %v2311_v28 = vadd.f32 %v2310_v24, %v2309_v16  ;;  %v2318_v29 = vadd.f32 %v2317_v25, %v2316_v17  ;;  %v2367_v30 = vrot.slane %v2275_v26, 4  ;;  %v2413_v41 = vmul.f32 %v2275_v26, %v2275_v26 }
 0x272   : > { %v2337_v48 = vrot.slane %v2336_v43, 1 }
 0x273   : > { %v2312_v33 = vrot.slane %v2311_v28, 2  ;;  %v2319_v34 = vrot.slane %v2318_v29, 2  ;;  %v2368_v35 = vsel %vm1620_vm9, %v2274_v32, %v2367_v30  ;;  %v2421_v47 = vsel %vm1620_vm9, %v2413_v41, 0.0 }
 0x274   : > { %v2370_v38 = vmul.f32 %v2368_v35, %v3056_v5  ;;  %v2422_v55 = vrot.slane %v2421_v47, 4  ;;  %v2338_v56 = vadd.f32 %v2337_v48, %v2336_v43  ;;  %v2296_v32 = vrot.slane %v2295_v23, 4 }
 0x275   : > { %v2313_v37 = vadd.f32 %v2312_v33, %v2311_v28  ;;  %v2320_v40 = vadd.f32 %v2319_v34, %v2318_v29  ;;  %v2420_v28 = vadd.f32 %v2419_v13, %v2418_v9  ;;  %v2289_v29 = vrot.slane %v2288_v15, 4 }
 0x276   : > { %2372 = vst [vmem:[#allocation1] ss:$2 sm:$0xff] %v2370_v38  ;;  %v2423_v62 = vadd.f32 %v2422_v55, %v2421_v47 }
 0x277   : > { %v2314_v44 = vrot.slane %v2313_v37, 1  ;;  %v2321_v20 = vrot.slane %v2320_v40, 1  ;;  %v2290_v39 = vadd.f32 %v2289_v29, %v2288_v15 }
 0x278   : > { %v2424_v4 = vrot.slane %v2423_v62, 2 }
 0x279   : > { %v2315_v50 = vadd.f32 %v2314_v44, %v2313_v37  ;;  %v2322_v52 = vadd.f32 %v2321_v20, %v2320_v40  ;;  %v2297_v40 = vadd.f32 %v2296_v32, %v2295_v23  ;;  %v2291_v20 = vrot.slane %v2290_v39, 2 }
 0x27a   : > { %v2425_v11 = vadd.f32 %v2424_v4, %v2423_v62 }
 0x27b   : > { %v2339_v58 = vmul.f32 %v2331_v54, %v2315_v50  ;;  %v2340_v61 = vmul.f32 %v2338_v56, %v2322_v52 }
 0x27c   : > { %v2426_v17 = vrot.slane %v2425_v11, 1 }
 0x27d   : > { %v2373_v51 = vld.sshfl [vmem:[#allocation1] sm:$0xff pattern:$0x75316420]  ;;  %v2374_v53 = vld.sshfl [vmem:[#allocation1 + $0x8] sm:$0xff pattern:$0x75316420] }
 0x27e   : > { %2393 = vst [vmem:[#allocation1] ss:$2 sm:$0xff] %v2391_v42  ;;  %v3314_v0 = vmax.f32 %v2339_v58, 1e-16  ;;  %v3316_v2 = vmax.f32 %v2340_v61, 1e-16  ;;  %v2427_v34 = vadd.f32 %v2426_v17, %v2425_v11 }
 0x27f   : > { %v2377_v24 = vsel %vm1620_vm9, %v2373_v51, 0.0  ;;  %v2384_v30 = vsel %vm1620_vm9, %v2374_v53, 0.0  ;;  %v2298_v42 = vrot.slane %v2297_v40, 2  ;;  %v2292_v53 = vadd.f32 %v2291_v20, %v2290_v39 }
 0x280   : > { %2772 = vrsqrt.f32 %v3314_v0  ;;  %v2378_v59 = vrot.slane %v2377_v24, 4  ;;  %v2385_v37 = vrot.slane %v2384_v30, 4  ;;  %vm2359_vm12 = vweird.f32 %v3316_v2 }
 0x281   : > { %2774 = vrsqrt.f32 %v3316_v2  ;;  %v2299_v52 = vadd.f32 %v2298_v42, %v2297_v40 }
 0x282   : > { %v2379_v41 = vadd.f32 %v2378_v59, %v2377_v24  ;;  %v2386_v46 = vadd.f32 %v2385_v37, %v2384_v30  ;;  %v2466_v59 = vlaneseq }
 0x284   : > { %v2380_v47 = vrot.slane %v2379_v41, 2  ;;  %v2387_v50 = vrot.slane %v2386_v46, 2  ;;  %vm2468_vm4 = vcmp.lt.s32.totalorder %v2466_v59, 256 }
 0x285   : > { %v2394_v5 = vld.sshfl [vmem:[#allocation1] sm:$0xff pattern:$0x75316420]  ;;  %v2395_v1 = vld.sshfl [vmem:[#allocation1 + $0x8] sm:$0xff pattern:$0x75316420] }
 0x286   : > { %v2398_v3 = vsel %vm1620_vm9, %v2394_v5, 0.0  ;;  %v2405_v7 = vsel %vm1620_vm9, %v2395_v1, 0.0  ;;  %v3324_v22 = vpop.eup %2772  ;;  %v2381_v55 = vadd.f32 %v2380_v47, %v2379_v41  ;;  %v2388_v62 = vadd.f32 %v2387_v50, %v2386_v46 }
 0x287   : > { %v2399_v6 = vrot.slane %v2398_v3, 4  ;;  %v2406_v8 = vrot.slane %v2405_v7, 4  ;;  %v3329_v26 = vpop.eup %2774  ;;  %v2344_v35 = vmul.f32 %v3324_v22, %v3314_v0  ;;  %v2293_v5 = vrot.slane %v2292_v53, 1 }
 0x288   : > { %v2354_v60 = vmul.f32 %v3329_v26, %v3316_v2  ;;  %vm2350_vm7 = vweird.f32 %v3324_v22  ;;  %v2382_v4 = vrot.slane %v2381_v55, 1  ;;  %vm2360_vm8 = vweird.f32 %v3329_v26 }
 0x289   : > { %v2400_v10 = vadd.f32 %v2399_v6, %v2398_v3  ;;  %v2407_v19 = vadd.f32 %v2406_v8, %v2405_v7  ;;  %v2345_v44 = vmul.f32 %v3324_v22, %v2344_v35  ;;  %v2300_v3 = vrot.slane %v2299_v52, 1  ;;  %vm3348_vm14 = vmor %vm2359_vm12, %vm2360_vm8 }
 0x28a   : > { %v2355_v45 = vmul.f32 %v3329_v26, %v2354_v60  ;;  %vm2349_vm9 = vweird.f32 %v3314_v0  ;;  %v2383_v13 = vadd.f32 %v2382_v4, %v2381_v55  ;;  %v2294_v2 = vadd.f32 %v2293_v5, %v2292_v53 }
 0x28b   : > { %v2401_v12 = vrot.slane %v2400_v10, 2  ;;  %v2408_v18 = vrot.slane %v2407_v19, 2  ;;  %v2346_v48 = vmul.f32 0.5, %v2345_v44  ;;  %vm3343_vm11 = vmor %vm2349_vm9, %vm2350_vm7  ;;  %v2301_v17 = vadd.f32 %v2300_v3, %v2299_v52 }
 0x28c   : > { %v2356_v49 = vmul.f32 0.5, %v2355_v45 }
 0x28d   : > { %v2402_v14 = vadd.f32 %v2401_v12, %v2400_v10  ;;  %v2409_v16 = vadd.f32 %v2408_v18, %v2407_v19  ;;  %v2347_v57 = vsub.f32 1.5, %v2346_v48  ;;  %v2389_v10 = vrot.slane %v2388_v62, 1 }
 0x28e   : > { %v2357_v58 = vsub.f32 1.5, %v2356_v49 }
 0x28f   : > { %v2403_v25 = vrot.slane %v2402_v14, 1  ;;  %v2410_v27 = vrot.slane %v2409_v16, 1  ;;  %v2348_v7 = vmul.f32 %v3324_v22, %v2347_v57  ;;  %v2390_v23 = vadd.f32 %v2389_v10, %v2388_v62 }
 0x290   : > { %v2358_v8 = vmul.f32 %v3329_v26, %v2357_v58 }
 0x291   : > { %v2404_v31 = vadd.f32 %v2403_v25, %v2402_v14  ;;  %v2411_v33 = vadd.f32 %v2410_v27, %v2409_v16  ;;  %v2352_v0 = vsel %vm3343_vm11, %v3324_v22, %v2348_v7 }
 0x292   : > { %v2362_v15 = vsel %vm3348_vm14, %v3329_v26, %v2358_v8 }
 0x293   : > { %v2428_v36 = vmul.f32 %v2420_v28, %v2404_v31  ;;  %v2429_v38 = vmul.f32 %v2427_v34, %v2411_v33  ;;  %v2363_v28 = vmul.f32 %v2352_v0, %v2294_v2  ;;  %v2364_v29 = vmul.f32 %v2362_v15, %v2301_v17  ;;  %v2456_v33 = vld [vmem:[#allocation6] sm:$0x3] }
 0x295   : > { %v2430_v21 = vmax.f32 %v2428_v36, 1e-16  ;;  %v2431_v43 = vmax.f32 %v2429_v38, 1e-16 }
 0x297   : > { %2776 = vrsqrt.f32 %v2430_v21  ;;  %vm2438_vm15 = vweird.f32 %v2430_v21  ;;  %vm2448_vm1 = vweird.f32 %v2431_v43 }
 0x298   : > { %2778 = vrsqrt.f32 %v2431_v43 }
 0x29d   : > { %v2777_v51 = vpop.eup %2776 }
 0x29e   : > { %v2779_v54 = vpop.eup %2778  ;;  %v2433_v56 = vmul.f32 %v2777_v51, %v2430_v21  ;;  %vm2439_vm10 = vweird.f32 %v2777_v51 }
 0x29f   : > { %v2443_v61 = vmul.f32 %v2779_v54, %v2431_v43  ;;  %vm2449_vm13 = vweird.f32 %v2779_v54  ;;  %vm2440_vm0 = vmor %vm2438_vm15, %vm2439_vm10 }
 0x2a0   : > { %v2434_v63 = vmul.f32 %v2777_v51, %v2433_v56  ;;  %vm2450_vm2 = vmor %vm2448_vm1, %vm2449_vm13 }
 0x2a1   : > { %v2444_v1 = vmul.f32 %v2779_v54, %v2443_v61 }
 0x2a2   : > { %v2435_v6 = vmul.f32 0.5, %v2434_v63 }
 0x2a3   : > { %v2445_v9 = vmul.f32 0.5, %v2444_v1 }
 0x2a4   : > { %v2436_v19 = vsub.f32 1.5, %v2435_v6 }
 0x2a5   : > { %v2446_v12 = vsub.f32 1.5, %v2445_v9 }
 0x2a6   : > { %v2437_v14 = vmul.f32 %v2777_v51, %v2436_v19 }
 0x2a7   : > { %v2447_v16 = vmul.f32 %v2779_v54, %v2446_v12 }
 0x2a8   : > { %v2441_v24 = vsel %vm2440_vm0, %v2777_v51, %v2437_v14 }
 0x2a9   : > { %v2451_v25 = vsel %vm2450_vm2, %v2779_v54, %v2447_v16  ;;  %v2452_v27 = vmul.f32 %v2441_v24, %v2383_v13 }
 0x2aa   : > { %v2453_v30 = vmul.f32 %v2451_v25, %v2390_v23 }
 0x2ab   : > { %v2454_v31 = vsub.f32 %v2363_v28, %v2452_v27 }
 0x2ac   : > { %v2455_v32 = vsub.f32 %v2364_v29, %v2453_v30 }
 0x2ad   : > { %v2457_v26 = vmul.f32 %v2454_v31, %v2454_v31 }
 0x2ae   : > { %v2458_v22 = vmul.f32 %v2455_v32, %v2455_v32 }
 0x2b0   : > { %v2461_v34 = vrot.slane %v2458_v22, 7 }
 0x2b2   : > { %v2463_v35 = vsel %vm2462_vm3, %v2457_v26, %v2461_v34 }
 0x2b3   : > { %v2465_v60 = vadd.f32 %v2463_v35, %v2456_v33 }
 0x2b5   : > { %2470 = vst.msk [vmem:[#allocation6] sm:$0x3] %vm2468_vm4, %v2465_v60 }
 0x2b6 PF: > { %2474 = sbr.rel (!%p1570_p3) target bundleno = 823 (0x337), region = 64  ;;  %vm2481_vm5 = vcmask (%p1570_p3), 1040384   ;;  %vm2487_vm6 = vcmask (%p1570_p3), 0  }
 0x2bc   : > { %v2475_v36 = vld [vmem:[#allocation6] sm:$0x3] }
 0x2bd   : > { %v2477_v37 = vperm.slane %v2475_v36, 0  ;;  %v2478_v38 = vperm.slane %v2475_v36, 1 }
 0x2bf   : > { %v2482_v39 = vsel %vm2481_vm5, %v2477_v37, 0.0  ;;  %v2483_v21 = vsel %vm2481_vm5, %v2478_v38, 0.0 }
 0x2c0   : > { %v2484_v40 = vadd.f32 %v2483_v21, %v2482_v39 }
 0x2c2   : > { %2485 = vadd.xlane.f32.xlu0 %v2484_v40 }
 0x335   : > { %v2486_v41 = vpop.xlane.xlu0 %2485 }
 0x336   : > { %2488 = vst.msk [vmem:[%s375_s15] sm:$0x1] %vm2487_vm6, %v2486_v41 }
 0x337 PF: > { %s21_s25 = sadd.s32 1, %s2910_s25   ;;  %s3414_s30 = sld [smem:[#allocation13_spill]] }
 0x338   : > { %p18_p5 = scmp.ge.s32.totalorder %s21_s25, 6   ;;  %s3415_s16 = sld [smem:[#allocation14_spill]] }
 0x339   : > { %s3416_s18 = smov %s2886_s19  ;;  %s3417_s19 = smov %s2890_s20 }
 0x33a   : > { %s3418_s20 = smov %s3012_s11  ;;  %s3419_s21 = smov %s2902_s23 }
 0x33b   : > { %s3420_s22 = smov %s2906_s24  ;;  %20 = sbr.rel (!%p18_p5) target bundleno = 9 (0x9), region = 115 }
 0x33d   : > { %s3421_s23 = smov %s3414_s30 }
 0x33e   : > { %s3422_s24 = smov %s3415_s16 }
 0x340   :  { %2506 = vsyncpa [#allocation8], 1 }
 0x341   :  { %2508 = vsyncpa [#allocation8 + $0x1], 1 }
 0x342   :  { %2509 = vsyncpa [#allocation10], 1 }
 0x343   :  { %2511 = vsyncpa [#allocation10 + $0x1], 1 }

</bundles_post_ra>
